<compile_context>
chip_gen: v5e
topology: v5e:2x2
jax: 0.10.0
libtpu: 0.0.40
codegen_flags: <defaults>
</compile_context>

<pallas_src>
import functools

import jax
import jax.numpy as jnp
import numpy as np
from jax.experimental import pallas as pl
from jax.experimental.pallas import tpu as pltpu


def _round_up(a, b):
    return ((a + b - 1) // b) * b


def _cdiv(a, b):
    return -(-a // b)


def _spconvt_kernel(x_ref, wv_ref, bv_ref, o_ref, *,
                    C_in, OC, r, kH, kW, W_out, TILE_H):
    """Fused conv + bias + sub-pixel width shuffle for one H tile.

    x_ref : VMEM [C_in, TILE_H_IN, r*Wp]    width-padded, width-dilated input tile
    wv_ref: VMEM [OC, C_in*kH*kW, W_out*r]  lane-interleaved conv weights (resident)
    bv_ref: VMEM [OC, W_out*r]              lane-interleaved conv bias    (resident)
    o_ref : VMEM [OC, TILE_H, W_out*r]      final (already shuffled) output tile
    """
    f32 = jnp.float32
    Wr = W_out * r

    for oc in range(OC):
        bias_row = bv_ref[pl.ds(oc, 1), :]                 # [1, Wr]  acc init
        acc = None
        t = 0
        for cin in range(C_in):
            for kh in range(kH):
                for kw in range(kW):
                    # tap[h, w*r+ri] = x_padded[cin, kh+h, w+kw]   (any ri)
                    tap = x_ref[cin, pl.ds(kh, TILE_H),
                                pl.ds(r * kw, Wr)].astype(f32)
                    wrow = wv_ref[oc, pl.ds(t, 1), :]      # [1, Wr]
                    term = wrow * tap                      # VPU broadcast-FMA
                    acc = bias_row + term if acc is None else acc + term
                    t += 1
        # One lane-dense store per output channel, no concat/slice copies.
        o_ref[oc] = acc.astype(o_ref.dtype)


def sp_conv_transpose_2d(x, weight, bias, *, r, out_channels, kernel_size,
                         group_size=101):
    """Pallas implementation of SPConvTranspose2d.forward.

    x:      [B=1, C_in, H, W]          (NCHW, like PyTorch)
    weight: [out_channels*r, C_in, kH, kW]
    bias:   [out_channels*r]
    """
    kH, kW = kernel_size
    B, C_in, H, W = x.shape
    OC = out_channels
    assert B == 1, "SPConvTranspose2d's sub-pixel view assumes batch == 1"

    Wp = W + 2                                   # ConstantPad2d((1, 1, 0, 0))
    H_out = H - kH + 1
    W_out = Wp - kW + 1
    assert W_out == group_size, (
        f"sub-pixel view requires conv output width == group_size "
        f"({W_out} != {group_size})")
    Wr = W_out * r
    T = C_in * kH * kW

    # ---- H tiling ---------------------------------------------------------
    # kH == 1 (the module's actual config): multiples of 8, capped at 32 for
    # vreg pressure, and >= 2 grid steps whenever H_out > 8 so the "parallel"
    # axis can be split across both v7x TensorCores.
    # kH > 1: one full-extent H block; a blocked index_map cannot express the
    # H halo, so tiling would read the wrong rows (review's latent-bug note).
    if kH == 1:
        TILE_H = _round_up(H_out, 8)
        if TILE_H > 8:
            TILE_H = min(32, _round_up(_cdiv(H_out, 2), 8))
    else:
        TILE_H = H_out
    TILE_H_IN = TILE_H + kH - 1
    num_h = _cdiv(H_out, TILE_H)

    # ---- input plumbing: pad + width-dilate by r --------------------------
    # xrep[c, h, u] = x_padded[c, h, u // r].  With it, the tap feeding the
    # shuffled output lane j = w*r + ri is xrep[cin, h+kh, j + r*kw] — a static
    # lane-offset slice, so the sub-pixel scatter costs nothing in-kernel.
    x3 = x.reshape(C_in, H, W)
    xp = jnp.pad(x3, ((0, 0), (0, 0), (1, 1)))
    xrep = jnp.repeat(xp, r, axis=-1)                       # [C_in, H, r*Wp]

    # ---- parameter plumbing (would be precomputed once per module) --------
    # wv[oc, t, w*r+ri] = weight[ri*OC+oc, cin, kh, kw],  t = (cin, kh, kw)
    wf = weight.astype(jnp.float32).reshape(r, OC, T)
    wv = jnp.broadcast_to(jnp.transpose(wf, (1, 2, 0))[:, :, None, :],
                          (OC, T, W_out, r)).reshape(OC, T, Wr)
    # bv[oc, w*r+ri] = bias[ri*OC+oc]
    bf = bias.astype(jnp.float32).reshape(r, OC)
    bv = jnp.broadcast_to(jnp.transpose(bf)[:, None, :],
                          (OC, W_out, r)).reshape(OC, Wr)

    kernel = functools.partial(
        _spconvt_kernel, C_in=C_in, OC=OC, r=r, kH=kH, kW=kW,
        W_out=W_out, TILE_H=TILE_H)

    out = pl.pallas_call(
        kernel,
        out_shape=jax.ShapeDtypeStruct((OC, H_out, Wr), x.dtype),
        grid=(num_h,),
        in_specs=[
            pl.BlockSpec((C_in, TILE_H_IN, r * Wp), lambda i: (0, i, 0)),
            pl.BlockSpec((OC, T, Wr), lambda i: (0, 0, 0)),   # resident weights
            pl.BlockSpec((OC, Wr), lambda i: (0, 0)),         # resident bias
        ],
        out_specs=pl.BlockSpec((OC, TILE_H, Wr), lambda i: (0, i, 0)),
        compiler_params=pltpu.CompilerParams(
            dimension_semantics=("parallel",)),
    )(xrep, wv, bv)

    # Kernel already emits the sub-pixel-shuffled layout; this reshape is a
    # free metadata change.
    return out.reshape(1, OC, H_out, group_size * r)


def _reference(x, weight, bias, *, r, out_channels, group_size):
    """Pure-JAX reference mirroring the PyTorch forward (f32-exact conv)."""
    x_pad = jnp.pad(x, ((0, 0), (0, 0), (0, 0), (1, 1)))
    conv = jax.lax.conv_general_dilated(
        x_pad, weight, window_strides=(1, 1), padding="VALID",
        dimension_numbers=("NCHW", "OIHW", "NCHW"),
        precision=jax.lax.Precision.HIGHEST)
    conv = conv + bias.reshape(1, -1, 1, 1)
    out = conv.reshape(1, r, out_channels, -1, group_size)
    out = jnp.transpose(out, (0, 2, 3, 4, 1))
    out = out.reshape(1, out_channels, -1, group_size * r)
    return out


if __name__ == "__main__":
    # Shapes consistent with the module: kernel (1,3) + pad (1,1) keeps width at
    # 101, which the hard-coded group_size=101 view requires; batch must be 1.
    B, C_in, H, W = 1, 4, 8, 101
    out_channels, r = 4, 2
    kernel_size = (1, 3)
    group_size = 101

    key = jax.random.PRNGKey(0)
    k_w, k_b, k_x = jax.random.split(key, 3)
    weight = 0.1 * jax.random.normal(
        k_w, (out_channels * r, C_in, kernel_size[0], kernel_size[1]), jnp.float32)
    bias = 0.1 * jax.random.normal(k_b, (out_channels * r,), jnp.float32)
    x = jax.random.normal(k_x, (B, C_in, H, W), jnp.float32)

    out = sp_conv_transpose_2d(x, weight, bias, r=r, out_channels=out_channels,
                               kernel_size=kernel_size, group_size=group_size)
    out = jax.block_until_ready(out)

    ref = _reference(x, weight, bias, r=r, out_channels=out_channels,
                     group_size=group_size)
    ref = jax.block_until_ready(ref)

    assert out.shape == (1, out_channels, H, group_size * r), out.shape
    np.testing.assert_allclose(np.asarray(out), np.asarray(ref),
                               rtol=1e-5, atol=1e-5)
    print("KERNEL_OK")
</pallas_src>

<mosaic_0001>
module attributes {stable_mosaic.version = 11 : i64} {
  func.func @_spconvt_kernel(%arg0: i32, %arg1: memref<4x8x206xf32, #tpu.memory_space<vmem>>, %arg2: memref<4x12x202xf32, #tpu.memory_space<vmem>>, %arg3: memref<4x202xf32, #tpu.memory_space<vmem>>, %arg4: memref<4x8x202xf32, #tpu.memory_space<vmem>>) attributes {dimension_semantics = [#tpu.dimension_semantics<parallel>], iteration_bounds = array<i64: 1>, scalar_prefetch = 0 : i64, scratch_operands = 0 : i64, tpu.core_type = #tpu.core_type<tc>, window_params = [{transform_indices = @transform_0, window_bounds = array<i64: 4, 8, 206>}, {pipeline_mode = #tpu.pipeline_mode<synchronous>, transform_indices = @transform_1, window_bounds = array<i64: 4, 12, 202>}, {pipeline_mode = #tpu.pipeline_mode<synchronous>, transform_indices = @transform_2, window_bounds = array<i64: 4, 202>}, {transform_indices = @transform_3, window_bounds = array<i64: 4, 8, 202>}]} {
    %c0 = arith.constant 0 : index
    %c0_0 = arith.constant 0 : index
    %0 = vector.load %arg3[%c0, %c0_0] : memref<4x202xf32, #tpu.memory_space<vmem>>, vector<1x202xf32>
    %c0_1 = arith.constant 0 : index
    %c0_2 = arith.constant 0 : index
    %c0_3 = arith.constant 0 : index
    %1 = vector.load %arg1[%c0_1, %c0_2, %c0_3] : memref<4x8x206xf32, #tpu.memory_space<vmem>>, vector<1x8x202xf32>
    %2 = vector.shape_cast %1 : vector<1x8x202xf32> to vector<8x202xf32>
    %c0_4 = arith.constant 0 : index
    %c0_5 = arith.constant 0 : index
    %c0_6 = arith.constant 0 : index
    %3 = vector.load %arg2[%c0_4, %c0_5, %c0_6] : memref<4x12x202xf32, #tpu.memory_space<vmem>>, vector<1x1x202xf32>
    %4 = vector.shape_cast %3 : vector<1x1x202xf32> to vector<1x202xf32>
    %5 = vector.broadcast %4 : vector<1x202xf32> to vector<8x202xf32>
    %6 = arith.mulf %5, %2 : vector<8x202xf32>
    %7 = vector.broadcast %0 : vector<1x202xf32> to vector<8x202xf32>
    %8 = arith.addf %7, %6 : vector<8x202xf32>
    %c0_7 = arith.constant 0 : index
    %c0_8 = arith.constant 0 : index
    %c2 = arith.constant 2 : index
    %9 = vector.load %arg1[%c0_7, %c0_8, %c2] : memref<4x8x206xf32, #tpu.memory_space<vmem>>, vector<1x8x202xf32>
    %10 = vector.shape_cast %9 : vector<1x8x202xf32> to vector<8x202xf32>
    %c0_9 = arith.constant 0 : index
    %c1 = arith.constant 1 : index
    %c0_10 = arith.constant 0 : index
    %11 = vector.load %arg2[%c0_9, %c1, %c0_10] : memref<4x12x202xf32, #tpu.memory_space<vmem>>, vector<1x1x202xf32>
    %12 = vector.shape_cast %11 : vector<1x1x202xf32> to vector<1x202xf32>
    %13 = vector.broadcast %12 : vector<1x202xf32> to vector<8x202xf32>
    %14 = arith.mulf %13, %10 : vector<8x202xf32>
    %15 = arith.addf %8, %14 : vector<8x202xf32>
    %c0_11 = arith.constant 0 : index
    %c0_12 = arith.constant 0 : index
    %c4 = arith.constant 4 : index
    %16 = vector.load %arg1[%c0_11, %c0_12, %c4] : memref<4x8x206xf32, #tpu.memory_space<vmem>>, vector<1x8x202xf32>
    %17 = vector.shape_cast %16 : vector<1x8x202xf32> to vector<8x202xf32>
    %c0_13 = arith.constant 0 : index
    %c2_14 = arith.constant 2 : index
    %c0_15 = arith.constant 0 : index
    %18 = vector.load %arg2[%c0_13, %c2_14, %c0_15] : memref<4x12x202xf32, #tpu.memory_space<vmem>>, vector<1x1x202xf32>
    %19 = vector.shape_cast %18 : vector<1x1x202xf32> to vector<1x202xf32>
    %20 = vector.broadcast %19 : vector<1x202xf32> to vector<8x202xf32>
    %21 = arith.mulf %20, %17 : vector<8x202xf32>
    %22 = arith.addf %15, %21 : vector<8x202xf32>
    %c1_16 = arith.constant 1 : index
    %c0_17 = arith.constant 0 : index
    %c0_18 = arith.constant 0 : index
    %23 = vector.load %arg1[%c1_16, %c0_17, %c0_18] : memref<4x8x206xf32, #tpu.memory_space<vmem>>, vector<1x8x202xf32>
    %24 = vector.shape_cast %23 : vector<1x8x202xf32> to vector<8x202xf32>
    %c0_19 = arith.constant 0 : index
    %c3 = arith.constant 3 : index
    %c0_20 = arith.constant 0 : index
    %25 = vector.load %arg2[%c0_19, %c3, %c0_20] : memref<4x12x202xf32, #tpu.memory_space<vmem>>, vector<1x1x202xf32>
    %26 = vector.shape_cast %25 : vector<1x1x202xf32> to vector<1x202xf32>
    %27 = vector.broadcast %26 : vector<1x202xf32> to vector<8x202xf32>
    %28 = arith.mulf %27, %24 : vector<8x202xf32>
    %29 = arith.addf %22, %28 : vector<8x202xf32>
    %c1_21 = arith.constant 1 : index
    %c0_22 = arith.constant 0 : index
    %c2_23 = arith.constant 2 : index
    %30 = vector.load %arg1[%c1_21, %c0_22, %c2_23] : memref<4x8x206xf32, #tpu.memory_space<vmem>>, vector<1x8x202xf32>
    %31 = vector.shape_cast %30 : vector<1x8x202xf32> to vector<8x202xf32>
    %c0_24 = arith.constant 0 : index
    %c4_25 = arith.constant 4 : index
    %c0_26 = arith.constant 0 : index
    %32 = vector.load %arg2[%c0_24, %c4_25, %c0_26] : memref<4x12x202xf32, #tpu.memory_space<vmem>>, vector<1x1x202xf32>
    %33 = vector.shape_cast %32 : vector<1x1x202xf32> to vector<1x202xf32>
    %34 = vector.broadcast %33 : vector<1x202xf32> to vector<8x202xf32>
    %35 = arith.mulf %34, %31 : vector<8x202xf32>
    %36 = arith.addf %29, %35 : vector<8x202xf32>
    %c1_27 = arith.constant 1 : index
    %c0_28 = arith.constant 0 : index
    %c4_29 = arith.constant 4 : index
    %37 = vector.load %arg1[%c1_27, %c0_28, %c4_29] : memref<4x8x206xf32, #tpu.memory_space<vmem>>, vector<1x8x202xf32>
    %38 = vector.shape_cast %37 : vector<1x8x202xf32> to vector<8x202xf32>
    %c0_30 = arith.constant 0 : index
    %c5 = arith.constant 5 : index
    %c0_31 = arith.constant 0 : index
    %39 = vector.load %arg2[%c0_30, %c5, %c0_31] : memref<4x12x202xf32, #tpu.memory_space<vmem>>, vector<1x1x202xf32>
    %40 = vector.shape_cast %39 : vector<1x1x202xf32> to vector<1x202xf32>
    %41 = vector.broadcast %40 : vector<1x202xf32> to vector<8x202xf32>
    %42 = arith.mulf %41, %38 : vector<8x202xf32>
    %43 = arith.addf %36, %42 : vector<8x202xf32>
    %c2_32 = arith.constant 2 : index
    %c0_33 = arith.constant 0 : index
    %c0_34 = arith.constant 0 : index
    %44 = vector.load %arg1[%c2_32, %c0_33, %c0_34] : memref<4x8x206xf32, #tpu.memory_space<vmem>>, vector<1x8x202xf32>
    %45 = vector.shape_cast %44 : vector<1x8x202xf32> to vector<8x202xf32>
    %c0_35 = arith.constant 0 : index
    %c6 = arith.constant 6 : index
    %c0_36 = arith.constant 0 : index
    %46 = vector.load %arg2[%c0_35, %c6, %c0_36] : memref<4x12x202xf32, #tpu.memory_space<vmem>>, vector<1x1x202xf32>
    %47 = vector.shape_cast %46 : vector<1x1x202xf32> to vector<1x202xf32>
    %48 = vector.broadcast %47 : vector<1x202xf32> to vector<8x202xf32>
    %49 = arith.mulf %48, %45 : vector<8x202xf32>
    %50 = arith.addf %43, %49 : vector<8x202xf32>
    %c2_37 = arith.constant 2 : index
    %c0_38 = arith.constant 0 : index
    %c2_39 = arith.constant 2 : index
    %51 = vector.load %arg1[%c2_37, %c0_38, %c2_39] : memref<4x8x206xf32, #tpu.memory_space<vmem>>, vector<1x8x202xf32>
    %52 = vector.shape_cast %51 : vector<1x8x202xf32> to vector<8x202xf32>
    %c0_40 = arith.constant 0 : index
    %c7 = arith.constant 7 : index
    %c0_41 = arith.constant 0 : index
    %53 = vector.load %arg2[%c0_40, %c7, %c0_41] : memref<4x12x202xf32, #tpu.memory_space<vmem>>, vector<1x1x202xf32>
    %54 = vector.shape_cast %53 : vector<1x1x202xf32> to vector<1x202xf32>
    %55 = vector.broadcast %54 : vector<1x202xf32> to vector<8x202xf32>
    %56 = arith.mulf %55, %52 : vector<8x202xf32>
    %57 = arith.addf %50, %56 : vector<8x202xf32>
    %c2_42 = arith.constant 2 : index
    %c0_43 = arith.constant 0 : index
    %c4_44 = arith.constant 4 : index
    %58 = vector.load %arg1[%c2_42, %c0_43, %c4_44] : memref<4x8x206xf32, #tpu.memory_space<vmem>>, vector<1x8x202xf32>
    %59 = vector.shape_cast %58 : vector<1x8x202xf32> to vector<8x202xf32>
    %c0_45 = arith.constant 0 : index
    %c8 = arith.constant 8 : index
    %c0_46 = arith.constant 0 : index
    %60 = vector.load %arg2[%c0_45, %c8, %c0_46] : memref<4x12x202xf32, #tpu.memory_space<vmem>>, vector<1x1x202xf32>
    %61 = vector.shape_cast %60 : vector<1x1x202xf32> to vector<1x202xf32>
    %62 = vector.broadcast %61 : vector<1x202xf32> to vector<8x202xf32>
    %63 = arith.mulf %62, %59 : vector<8x202xf32>
    %64 = arith.addf %57, %63 : vector<8x202xf32>
    %c3_47 = arith.constant 3 : index
    %c0_48 = arith.constant 0 : index
    %c0_49 = arith.constant 0 : index
    %65 = vector.load %arg1[%c3_47, %c0_48, %c0_49] : memref<4x8x206xf32, #tpu.memory_space<vmem>>, vector<1x8x202xf32>
    %66 = vector.shape_cast %65 : vector<1x8x202xf32> to vector<8x202xf32>
    %c0_50 = arith.constant 0 : index
    %c9 = arith.constant 9 : index
    %c0_51 = arith.constant 0 : index
    %67 = vector.load %arg2[%c0_50, %c9, %c0_51] : memref<4x12x202xf32, #tpu.memory_space<vmem>>, vector<1x1x202xf32>
    %68 = vector.shape_cast %67 : vector<1x1x202xf32> to vector<1x202xf32>
    %69 = vector.broadcast %68 : vector<1x202xf32> to vector<8x202xf32>
    %70 = arith.mulf %69, %66 : vector<8x202xf32>
    %71 = arith.addf %64, %70 : vector<8x202xf32>
    %c3_52 = arith.constant 3 : index
    %c0_53 = arith.constant 0 : index
    %c2_54 = arith.constant 2 : index
    %72 = vector.load %arg1[%c3_52, %c0_53, %c2_54] : memref<4x8x206xf32, #tpu.memory_space<vmem>>, vector<1x8x202xf32>
    %73 = vector.shape_cast %72 : vector<1x8x202xf32> to vector<8x202xf32>
    %c0_55 = arith.constant 0 : index
    %c10 = arith.constant 10 : index
    %c0_56 = arith.constant 0 : index
    %74 = vector.load %arg2[%c0_55, %c10, %c0_56] : memref<4x12x202xf32, #tpu.memory_space<vmem>>, vector<1x1x202xf32>
    %75 = vector.shape_cast %74 : vector<1x1x202xf32> to vector<1x202xf32>
    %76 = vector.broadcast %75 : vector<1x202xf32> to vector<8x202xf32>
    %77 = arith.mulf %76, %73 : vector<8x202xf32>
    %78 = arith.addf %71, %77 : vector<8x202xf32>
    %c3_57 = arith.constant 3 : index
    %c0_58 = arith.constant 0 : index
    %c4_59 = arith.constant 4 : index
    %79 = vector.load %arg1[%c3_57, %c0_58, %c4_59] : memref<4x8x206xf32, #tpu.memory_space<vmem>>, vector<1x8x202xf32>
    %80 = vector.shape_cast %79 : vector<1x8x202xf32> to vector<8x202xf32>
    %c0_60 = arith.constant 0 : index
    %c11 = arith.constant 11 : index
    %c0_61 = arith.constant 0 : index
    %81 = vector.load %arg2[%c0_60, %c11, %c0_61] : memref<4x12x202xf32, #tpu.memory_space<vmem>>, vector<1x1x202xf32>
    %82 = vector.shape_cast %81 : vector<1x1x202xf32> to vector<1x202xf32>
    %83 = vector.broadcast %82 : vector<1x202xf32> to vector<8x202xf32>
    %84 = arith.mulf %83, %80 : vector<8x202xf32>
    %85 = arith.addf %78, %84 : vector<8x202xf32>
    %c0_62 = arith.constant 0 : index
    %c0_63 = arith.constant 0 : index
    %c0_64 = arith.constant 0 : index
    %86 = vector.load %arg4[%c0_62, %c0_63, %c0_64] : memref<4x8x202xf32, #tpu.memory_space<vmem>>, vector<1x8x202xf32>
    %87 = vector.shape_cast %86 : vector<1x8x202xf32> to vector<8x202xf32>
    %88 = vector.shape_cast %85 : vector<8x202xf32> to vector<1x8x202xf32>
    tpu.vector_store %arg4[%c0_62, %c0_63, %c0_64], %88 {strides = array<i32>} : memref<4x8x202xf32, #tpu.memory_space<vmem>>, vector<1x8x202xf32>,
    %c1_65 = arith.constant 1 : index
    %c0_66 = arith.constant 0 : index
    %89 = vector.load %arg3[%c1_65, %c0_66] : memref<4x202xf32, #tpu.memory_space<vmem>>, vector<1x202xf32>
    %c0_67 = arith.constant 0 : index
    %c0_68 = arith.constant 0 : index
    %c0_69 = arith.constant 0 : index
    %90 = vector.load %arg1[%c0_67, %c0_68, %c0_69] : memref<4x8x206xf32, #tpu.memory_space<vmem>>, vector<1x8x202xf32>
    %91 = vector.shape_cast %90 : vector<1x8x202xf32> to vector<8x202xf32>
    %c1_70 = arith.constant 1 : index
    %c0_71 = arith.constant 0 : index
    %c0_72 = arith.constant 0 : index
    %92 = vector.load %arg2[%c1_70, %c0_71, %c0_72] : memref<4x12x202xf32, #tpu.memory_space<vmem>>, vector<1x1x202xf32>
    %93 = vector.shape_cast %92 : vector<1x1x202xf32> to vector<1x202xf32>
    %94 = vector.broadcast %93 : vector<1x202xf32> to vector<8x202xf32>
    %95 = arith.mulf %94, %91 : vector<8x202xf32>
    %96 = vector.broadcast %89 : vector<1x202xf32> to vector<8x202xf32>
    %97 = arith.addf %96, %95 : vector<8x202xf32>
    %c0_73 = arith.constant 0 : index
    %c0_74 = arith.constant 0 : index
    %c2_75 = arith.constant 2 : index
    %98 = vector.load %arg1[%c0_73, %c0_74, %c2_75] : memref<4x8x206xf32, #tpu.memory_space<vmem>>, vector<1x8x202xf32>
    %99 = vector.shape_cast %98 : vector<1x8x202xf32> to vector<8x202xf32>
    %c1_76 = arith.constant 1 : index
    %c1_77 = arith.constant 1 : index
    %c0_78 = arith.constant 0 : index
    %100 = vector.load %arg2[%c1_76, %c1_77, %c0_78] : memref<4x12x202xf32, #tpu.memory_space<vmem>>, vector<1x1x202xf32>
    %101 = vector.shape_cast %100 : vector<1x1x202xf32> to vector<1x202xf32>
    %102 = vector.broadcast %101 : vector<1x202xf32> to vector<8x202xf32>
    %103 = arith.mulf %102, %99 : vector<8x202xf32>
    %104 = arith.addf %97, %103 : vector<8x202xf32>
    %c0_79 = arith.constant 0 : index
    %c0_80 = arith.constant 0 : index
    %c4_81 = arith.constant 4 : index
    %105 = vector.load %arg1[%c0_79, %c0_80, %c4_81] : memref<4x8x206xf32, #tpu.memory_space<vmem>>, vector<1x8x202xf32>
    %106 = vector.shape_cast %105 : vector<1x8x202xf32> to vector<8x202xf32>
    %c1_82 = arith.constant 1 : index
    %c2_83 = arith.constant 2 : index
    %c0_84 = arith.constant 0 : index
    %107 = vector.load %arg2[%c1_82, %c2_83, %c0_84] : memref<4x12x202xf32, #tpu.memory_space<vmem>>, vector<1x1x202xf32>
    %108 = vector.shape_cast %107 : vector<1x1x202xf32> to vector<1x202xf32>
    %109 = vector.broadcast %108 : vector<1x202xf32> to vector<8x202xf32>
    %110 = arith.mulf %109, %106 : vector<8x202xf32>
    %111 = arith.addf %104, %110 : vector<8x202xf32>
    %c1_85 = arith.constant 1 : index
    %c0_86 = arith.constant 0 : index
    %c0_87 = arith.constant 0 : index
    %112 = vector.load %arg1[%c1_85, %c0_86, %c0_87] : memref<4x8x206xf32, #tpu.memory_space<vmem>>, vector<1x8x202xf32>
    %113 = vector.shape_cast %112 : vector<1x8x202xf32> to vector<8x202xf32>
    %c1_88 = arith.constant 1 : index
    %c3_89 = arith.constant 3 : index
    %c0_90 = arith.constant 0 : index
    %114 = vector.load %arg2[%c1_88, %c3_89, %c0_90] : memref<4x12x202xf32, #tpu.memory_space<vmem>>, vector<1x1x202xf32>
    %115 = vector.shape_cast %114 : vector<1x1x202xf32> to vector<1x202xf32>
    %116 = vector.broadcast %115 : vector<1x202xf32> to vector<8x202xf32>
    %117 = arith.mulf %116, %113 : vector<8x202xf32>
    %118 = arith.addf %111, %117 : vector<8x202xf32>
    %c1_91 = arith.constant 1 : index
    %c0_92 = arith.constant 0 : index
    %c2_93 = arith.constant 2 : index
    %119 = vector.load %arg1[%c1_91, %c0_92, %c2_93] : memref<4x8x206xf32, #tpu.memory_space<vmem>>, vector<1x8x202xf32>
    %120 = vector.shape_cast %119 : vector<1x8x202xf32> to vector<8x202xf32>
    %c1_94 = arith.constant 1 : index
    %c4_95 = arith.constant 4 : index
    %c0_96 = arith.constant 0 : index
    %121 = vector.load %arg2[%c1_94, %c4_95, %c0_96] : memref<4x12x202xf32, #tpu.memory_space<vmem>>, vector<1x1x202xf32>
    %122 = vector.shape_cast %121 : vector<1x1x202xf32> to vector<1x202xf32>
    %123 = vector.broadcast %122 : vector<1x202xf32> to vector<8x202xf32>
    %124 = arith.mulf %123, %120 : vector<8x202xf32>
    %125 = arith.addf %118, %124 : vector<8x202xf32>
    %c1_97 = arith.constant 1 : index
    %c0_98 = arith.constant 0 : index
    %c4_99 = arith.constant 4 : index
    %126 = vector.load %arg1[%c1_97, %c0_98, %c4_99] : memref<4x8x206xf32, #tpu.memory_space<vmem>>, vector<1x8x202xf32>
    %127 = vector.shape_cast %126 : vector<1x8x202xf32> to vector<8x202xf32>
    %c1_100 = arith.constant 1 : index
    %c5_101 = arith.constant 5 : index
    %c0_102 = arith.constant 0 : index
    %128 = vector.load %arg2[%c1_100, %c5_101, %c0_102] : memref<4x12x202xf32, #tpu.memory_space<vmem>>, vector<1x1x202xf32>
    %129 = vector.shape_cast %128 : vector<1x1x202xf32> to vector<1x202xf32>
    %130 = vector.broadcast %129 : vector<1x202xf32> to vector<8x202xf32>
    %131 = arith.mulf %130, %127 : vector<8x202xf32>
    %132 = arith.addf %125, %131 : vector<8x202xf32>
    %c2_103 = arith.constant 2 : index
    %c0_104 = arith.constant 0 : index
    %c0_105 = arith.constant 0 : index
    %133 = vector.load %arg1[%c2_103, %c0_104, %c0_105] : memref<4x8x206xf32, #tpu.memory_space<vmem>>, vector<1x8x202xf32>
    %134 = vector.shape_cast %133 : vector<1x8x202xf32> to vector<8x202xf32>
    %c1_106 = arith.constant 1 : index
    %c6_107 = arith.constant 6 : index
    %c0_108 = arith.constant 0 : index
    %135 = vector.load %arg2[%c1_106, %c6_107, %c0_108] : memref<4x12x202xf32, #tpu.memory_space<vmem>>, vector<1x1x202xf32>
    %136 = vector.shape_cast %135 : vector<1x1x202xf32> to vector<1x202xf32>
    %137 = vector.broadcast %136 : vector<1x202xf32> to vector<8x202xf32>
    %138 = arith.mulf %137, %134 : vector<8x202xf32>
    %139 = arith.addf %132, %138 : vector<8x202xf32>
    %c2_109 = arith.constant 2 : index
    %c0_110 = arith.constant 0 : index
    %c2_111 = arith.constant 2 : index
    %140 = vector.load %arg1[%c2_109, %c0_110, %c2_111] : memref<4x8x206xf32, #tpu.memory_space<vmem>>, vector<1x8x202xf32>
    %141 = vector.shape_cast %140 : vector<1x8x202xf32> to vector<8x202xf32>
    %c1_112 = arith.constant 1 : index
    %c7_113 = arith.constant 7 : index
    %c0_114 = arith.constant 0 : index
    %142 = vector.load %arg2[%c1_112, %c7_113, %c0_114] : memref<4x12x202xf32, #tpu.memory_space<vmem>>, vector<1x1x202xf32>
    %143 = vector.shape_cast %142 : vector<1x1x202xf32> to vector<1x202xf32>
    %144 = vector.broadcast %143 : vector<1x202xf32> to vector<8x202xf32>
    %145 = arith.mulf %144, %141 : vector<8x202xf32>
    %146 = arith.addf %139, %145 : vector<8x202xf32>
    %c2_115 = arith.constant 2 : index
    %c0_116 = arith.constant 0 : index
    %c4_117 = arith.constant 4 : index
    %147 = vector.load %arg1[%c2_115, %c0_116, %c4_117] : memref<4x8x206xf32, #tpu.memory_space<vmem>>, vector<1x8x202xf32>
    %148 = vector.shape_cast %147 : vector<1x8x202xf32> to vector<8x202xf32>
    %c1_118 = arith.constant 1 : index
    %c8_119 = arith.constant 8 : index
    %c0_120 = arith.constant 0 : index
    %149 = vector.load %arg2[%c1_118, %c8_119, %c0_120] : memref<4x12x202xf32, #tpu.memory_space<vmem>>, vector<1x1x202xf32>
    %150 = vector.shape_cast %149 : vector<1x1x202xf32> to vector<1x202xf32>
    %151 = vector.broadcast %150 : vector<1x202xf32> to vector<8x202xf32>
    %152 = arith.mulf %151, %148 : vector<8x202xf32>
    %153 = arith.addf %146, %152 : vector<8x202xf32>
    %c3_121 = arith.constant 3 : index
    %c0_122 = arith.constant 0 : index
    %c0_123 = arith.constant 0 : index
    %154 = vector.load %arg1[%c3_121, %c0_122, %c0_123] : memref<4x8x206xf32, #tpu.memory_space<vmem>>, vector<1x8x202xf32>
    %155 = vector.shape_cast %154 : vector<1x8x202xf32> to vector<8x202xf32>
    %c1_124 = arith.constant 1 : index
    %c9_125 = arith.constant 9 : index
    %c0_126 = arith.constant 0 : index
    %156 = vector.load %arg2[%c1_124, %c9_125, %c0_126] : memref<4x12x202xf32, #tpu.memory_space<vmem>>, vector<1x1x202xf32>
    %157 = vector.shape_cast %156 : vector<1x1x202xf32> to vector<1x202xf32>
    %158 = vector.broadcast %157 : vector<1x202xf32> to vector<8x202xf32>
    %159 = arith.mulf %158, %155 : vector<8x202xf32>
    %160 = arith.addf %153, %159 : vector<8x202xf32>
    %c3_127 = arith.constant 3 : index
    %c0_128 = arith.constant 0 : index
    %c2_129 = arith.constant 2 : index
    %161 = vector.load %arg1[%c3_127, %c0_128, %c2_129] : memref<4x8x206xf32, #tpu.memory_space<vmem>>, vector<1x8x202xf32>
    %162 = vector.shape_cast %161 : vector<1x8x202xf32> to vector<8x202xf32>
    %c1_130 = arith.constant 1 : index
    %c10_131 = arith.constant 10 : index
    %c0_132 = arith.constant 0 : index
    %163 = vector.load %arg2[%c1_130, %c10_131, %c0_132] : memref<4x12x202xf32, #tpu.memory_space<vmem>>, vector<1x1x202xf32>
    %164 = vector.shape_cast %163 : vector<1x1x202xf32> to vector<1x202xf32>
    %165 = vector.broadcast %164 : vector<1x202xf32> to vector<8x202xf32>
    %166 = arith.mulf %165, %162 : vector<8x202xf32>
    %167 = arith.addf %160, %166 : vector<8x202xf32>
    %c3_133 = arith.constant 3 : index
    %c0_134 = arith.constant 0 : index
    %c4_135 = arith.constant 4 : index
    %168 = vector.load %arg1[%c3_133, %c0_134, %c4_135] : memref<4x8x206xf32, #tpu.memory_space<vmem>>, vector<1x8x202xf32>
    %169 = vector.shape_cast %168 : vector<1x8x202xf32> to vector<8x202xf32>
    %c1_136 = arith.constant 1 : index
    %c11_137 = arith.constant 11 : index
    %c0_138 = arith.constant 0 : index
    %170 = vector.load %arg2[%c1_136, %c11_137, %c0_138] : memref<4x12x202xf32, #tpu.memory_space<vmem>>, vector<1x1x202xf32>
    %171 = vector.shape_cast %170 : vector<1x1x202xf32> to vector<1x202xf32>
    %172 = vector.broadcast %171 : vector<1x202xf32> to vector<8x202xf32>
    %173 = arith.mulf %172, %169 : vector<8x202xf32>
    %174 = arith.addf %167, %173 : vector<8x202xf32>
    %c1_139 = arith.constant 1 : index
    %c0_140 = arith.constant 0 : index
    %c0_141 = arith.constant 0 : index
    %175 = vector.load %arg4[%c1_139, %c0_140, %c0_141] : memref<4x8x202xf32, #tpu.memory_space<vmem>>, vector<1x8x202xf32>
    %176 = vector.shape_cast %175 : vector<1x8x202xf32> to vector<8x202xf32>
    %177 = vector.shape_cast %174 : vector<8x202xf32> to vector<1x8x202xf32>
    tpu.vector_store %arg4[%c1_139, %c0_140, %c0_141], %177 {strides = array<i32>} : memref<4x8x202xf32, #tpu.memory_space<vmem>>, vector<1x8x202xf32>,
    %c2_142 = arith.constant 2 : index
    %c0_143 = arith.constant 0 : index
    %178 = vector.load %arg3[%c2_142, %c0_143] : memref<4x202xf32, #tpu.memory_space<vmem>>, vector<1x202xf32>
    %c0_144 = arith.constant 0 : index
    %c0_145 = arith.constant 0 : index
    %c0_146 = arith.constant 0 : index
    %179 = vector.load %arg1[%c0_144, %c0_145, %c0_146] : memref<4x8x206xf32, #tpu.memory_space<vmem>>, vector<1x8x202xf32>
    %180 = vector.shape_cast %179 : vector<1x8x202xf32> to vector<8x202xf32>
    %c2_147 = arith.constant 2 : index
    %c0_148 = arith.constant 0 : index
    %c0_149 = arith.constant 0 : index
    %181 = vector.load %arg2[%c2_147, %c0_148, %c0_149] : memref<4x12x202xf32, #tpu.memory_space<vmem>>, vector<1x1x202xf32>
    %182 = vector.shape_cast %181 : vector<1x1x202xf32> to vector<1x202xf32>
    %183 = vector.broadcast %182 : vector<1x202xf32> to vector<8x202xf32>
    %184 = arith.mulf %183, %180 : vector<8x202xf32>
    %185 = vector.broadcast %178 : vector<1x202xf32> to vector<8x202xf32>
    %186 = arith.addf %185, %184 : vector<8x202xf32>
    %c0_150 = arith.constant 0 : index
    %c0_151 = arith.constant 0 : index
    %c2_152 = arith.constant 2 : index
    %187 = vector.load %arg1[%c0_150, %c0_151, %c2_152] : memref<4x8x206xf32, #tpu.memory_space<vmem>>, vector<1x8x202xf32>
    %188 = vector.shape_cast %187 : vector<1x8x202xf32> to vector<8x202xf32>
    %c2_153 = arith.constant 2 : index
    %c1_154 = arith.constant 1 : index
    %c0_155 = arith.constant 0 : index
    %189 = vector.load %arg2[%c2_153, %c1_154, %c0_155] : memref<4x12x202xf32, #tpu.memory_space<vmem>>, vector<1x1x202xf32>
    %190 = vector.shape_cast %189 : vector<1x1x202xf32> to vector<1x202xf32>
    %191 = vector.broadcast %190 : vector<1x202xf32> to vector<8x202xf32>
    %192 = arith.mulf %191, %188 : vector<8x202xf32>
    %193 = arith.addf %186, %192 : vector<8x202xf32>
    %c0_156 = arith.constant 0 : index
    %c0_157 = arith.constant 0 : index
    %c4_158 = arith.constant 4 : index
    %194 = vector.load %arg1[%c0_156, %c0_157, %c4_158] : memref<4x8x206xf32, #tpu.memory_space<vmem>>, vector<1x8x202xf32>
    %195 = vector.shape_cast %194 : vector<1x8x202xf32> to vector<8x202xf32>
    %c2_159 = arith.constant 2 : index
    %c2_160 = arith.constant 2 : index
    %c0_161 = arith.constant 0 : index
    %196 = vector.load %arg2[%c2_159, %c2_160, %c0_161] : memref<4x12x202xf32, #tpu.memory_space<vmem>>, vector<1x1x202xf32>
    %197 = vector.shape_cast %196 : vector<1x1x202xf32> to vector<1x202xf32>
    %198 = vector.broadcast %197 : vector<1x202xf32> to vector<8x202xf32>
    %199 = arith.mulf %198, %195 : vector<8x202xf32>
    %200 = arith.addf %193, %199 : vector<8x202xf32>
    %c1_162 = arith.constant 1 : index
    %c0_163 = arith.constant 0 : index
    %c0_164 = arith.constant 0 : index
    %201 = vector.load %arg1[%c1_162, %c0_163, %c0_164] : memref<4x8x206xf32, #tpu.memory_space<vmem>>, vector<1x8x202xf32>
    %202 = vector.shape_cast %201 : vector<1x8x202xf32> to vector<8x202xf32>
    %c2_165 = arith.constant 2 : index
    %c3_166 = arith.constant 3 : index
    %c0_167 = arith.constant 0 : index
    %203 = vector.load %arg2[%c2_165, %c3_166, %c0_167] : memref<4x12x202xf32, #tpu.memory_space<vmem>>, vector<1x1x202xf32>
    %204 = vector.shape_cast %203 : vector<1x1x202xf32> to vector<1x202xf32>
    %205 = vector.broadcast %204 : vector<1x202xf32> to vector<8x202xf32>
    %206 = arith.mulf %205, %202 : vector<8x202xf32>
    %207 = arith.addf %200, %206 : vector<8x202xf32>
    %c1_168 = arith.constant 1 : index
    %c0_169 = arith.constant 0 : index
    %c2_170 = arith.constant 2 : index
    %208 = vector.load %arg1[%c1_168, %c0_169, %c2_170] : memref<4x8x206xf32, #tpu.memory_space<vmem>>, vector<1x8x202xf32>
    %209 = vector.shape_cast %208 : vector<1x8x202xf32> to vector<8x202xf32>
    %c2_171 = arith.constant 2 : index
    %c4_172 = arith.constant 4 : index
    %c0_173 = arith.constant 0 : index
    %210 = vector.load %arg2[%c2_171, %c4_172, %c0_173] : memref<4x12x202xf32, #tpu.memory_space<vmem>>, vector<1x1x202xf32>
    %211 = vector.shape_cast %210 : vector<1x1x202xf32> to vector<1x202xf32>
    %212 = vector.broadcast %211 : vector<1x202xf32> to vector<8x202xf32>
    %213 = arith.mulf %212, %209 : vector<8x202xf32>
    %214 = arith.addf %207, %213 : vector<8x202xf32>
    %c1_174 = arith.constant 1 : index
    %c0_175 = arith.constant 0 : index
    %c4_176 = arith.constant 4 : index
    %215 = vector.load %arg1[%c1_174, %c0_175, %c4_176] : memref<4x8x206xf32, #tpu.memory_space<vmem>>, vector<1x8x202xf32>
    %216 = vector.shape_cast %215 : vector<1x8x202xf32> to vector<8x202xf32>
    %c2_177 = arith.constant 2 : index
    %c5_178 = arith.constant 5 : index
    %c0_179 = arith.constant 0 : index
    %217 = vector.load %arg2[%c2_177, %c5_178, %c0_179] : memref<4x12x202xf32, #tpu.memory_space<vmem>>, vector<1x1x202xf32>
    %218 = vector.shape_cast %217 : vector<1x1x202xf32> to vector<1x202xf32>
    %219 = vector.broadcast %218 : vector<1x202xf32> to vector<8x202xf32>
    %220 = arith.mulf %219, %216 : vector<8x202xf32>
    %221 = arith.addf %214, %220 : vector<8x202xf32>
    %c2_180 = arith.constant 2 : index
    %c0_181 = arith.constant 0 : index
    %c0_182 = arith.constant 0 : index
    %222 = vector.load %arg1[%c2_180, %c0_181, %c0_182] : memref<4x8x206xf32, #tpu.memory_space<vmem>>, vector<1x8x202xf32>
    %223 = vector.shape_cast %222 : vector<1x8x202xf32> to vector<8x202xf32>
    %c2_183 = arith.constant 2 : index
    %c6_184 = arith.constant 6 : index
    %c0_185 = arith.constant 0 : index
    %224 = vector.load %arg2[%c2_183, %c6_184, %c0_185] : memref<4x12x202xf32, #tpu.memory_space<vmem>>, vector<1x1x202xf32>
    %225 = vector.shape_cast %224 : vector<1x1x202xf32> to vector<1x202xf32>
    %226 = vector.broadcast %225 : vector<1x202xf32> to vector<8x202xf32>
    %227 = arith.mulf %226, %223 : vector<8x202xf32>
    %228 = arith.addf %221, %227 : vector<8x202xf32>
    %c2_186 = arith.constant 2 : index
    %c0_187 = arith.constant 0 : index
    %c2_188 = arith.constant 2 : index
    %229 = vector.load %arg1[%c2_186, %c0_187, %c2_188] : memref<4x8x206xf32, #tpu.memory_space<vmem>>, vector<1x8x202xf32>
    %230 = vector.shape_cast %229 : vector<1x8x202xf32> to vector<8x202xf32>
    %c2_189 = arith.constant 2 : index
    %c7_190 = arith.constant 7 : index
    %c0_191 = arith.constant 0 : index
    %231 = vector.load %arg2[%c2_189, %c7_190, %c0_191] : memref<4x12x202xf32, #tpu.memory_space<vmem>>, vector<1x1x202xf32>
    %232 = vector.shape_cast %231 : vector<1x1x202xf32> to vector<1x202xf32>
    %233 = vector.broadcast %232 : vector<1x202xf32> to vector<8x202xf32>
    %234 = arith.mulf %233, %230 : vector<8x202xf32>
    %235 = arith.addf %228, %234 : vector<8x202xf32>
    %c2_192 = arith.constant 2 : index
    %c0_193 = arith.constant 0 : index
    %c4_194 = arith.constant 4 : index
    %236 = vector.load %arg1[%c2_192, %c0_193, %c4_194] : memref<4x8x206xf32, #tpu.memory_space<vmem>>, vector<1x8x202xf32>
    %237 = vector.shape_cast %236 : vector<1x8x202xf32> to vector<8x202xf32>
    %c2_195 = arith.constant 2 : index
    %c8_196 = arith.constant 8 : index
    %c0_197 = arith.constant 0 : index
    %238 = vector.load %arg2[%c2_195, %c8_196, %c0_197] : memref<4x12x202xf32, #tpu.memory_space<vmem>>, vector<1x1x202xf32>
    %239 = vector.shape_cast %238 : vector<1x1x202xf32> to vector<1x202xf32>
    %240 = vector.broadcast %239 : vector<1x202xf32> to vector<8x202xf32>
    %241 = arith.mulf %240, %237 : vector<8x202xf32>
    %242 = arith.addf %235, %241 : vector<8x202xf32>
    %c3_198 = arith.constant 3 : index
    %c0_199 = arith.constant 0 : index
    %c0_200 = arith.constant 0 : index
    %243 = vector.load %arg1[%c3_198, %c0_199, %c0_200] : memref<4x8x206xf32, #tpu.memory_space<vmem>>, vector<1x8x202xf32>
    %244 = vector.shape_cast %243 : vector<1x8x202xf32> to vector<8x202xf32>
    %c2_201 = arith.constant 2 : index
    %c9_202 = arith.constant 9 : index
    %c0_203 = arith.constant 0 : index
    %245 = vector.load %arg2[%c2_201, %c9_202, %c0_203] : memref<4x12x202xf32, #tpu.memory_space<vmem>>, vector<1x1x202xf32>
    %246 = vector.shape_cast %245 : vector<1x1x202xf32> to vector<1x202xf32>
    %247 = vector.broadcast %246 : vector<1x202xf32> to vector<8x202xf32>
    %248 = arith.mulf %247, %244 : vector<8x202xf32>
    %249 = arith.addf %242, %248 : vector<8x202xf32>
    %c3_204 = arith.constant 3 : index
    %c0_205 = arith.constant 0 : index
    %c2_206 = arith.constant 2 : index
    %250 = vector.load %arg1[%c3_204, %c0_205, %c2_206] : memref<4x8x206xf32, #tpu.memory_space<vmem>>, vector<1x8x202xf32>
    %251 = vector.shape_cast %250 : vector<1x8x202xf32> to vector<8x202xf32>
    %c2_207 = arith.constant 2 : index
    %c10_208 = arith.constant 10 : index
    %c0_209 = arith.constant 0 : index
    %252 = vector.load %arg2[%c2_207, %c10_208, %c0_209] : memref<4x12x202xf32, #tpu.memory_space<vmem>>, vector<1x1x202xf32>
    %253 = vector.shape_cast %252 : vector<1x1x202xf32> to vector<1x202xf32>
    %254 = vector.broadcast %253 : vector<1x202xf32> to vector<8x202xf32>
    %255 = arith.mulf %254, %251 : vector<8x202xf32>
    %256 = arith.addf %249, %255 : vector<8x202xf32>
    %c3_210 = arith.constant 3 : index
    %c0_211 = arith.constant 0 : index
    %c4_212 = arith.constant 4 : index
    %257 = vector.load %arg1[%c3_210, %c0_211, %c4_212] : memref<4x8x206xf32, #tpu.memory_space<vmem>>, vector<1x8x202xf32>
    %258 = vector.shape_cast %257 : vector<1x8x202xf32> to vector<8x202xf32>
    %c2_213 = arith.constant 2 : index
    %c11_214 = arith.constant 11 : index
    %c0_215 = arith.constant 0 : index
    %259 = vector.load %arg2[%c2_213, %c11_214, %c0_215] : memref<4x12x202xf32, #tpu.memory_space<vmem>>, vector<1x1x202xf32>
    %260 = vector.shape_cast %259 : vector<1x1x202xf32> to vector<1x202xf32>
    %261 = vector.broadcast %260 : vector<1x202xf32> to vector<8x202xf32>
    %262 = arith.mulf %261, %258 : vector<8x202xf32>
    %263 = arith.addf %256, %262 : vector<8x202xf32>
    %c2_216 = arith.constant 2 : index
    %c0_217 = arith.constant 0 : index
    %c0_218 = arith.constant 0 : index
    %264 = vector.load %arg4[%c2_216, %c0_217, %c0_218] : memref<4x8x202xf32, #tpu.memory_space<vmem>>, vector<1x8x202xf32>
    %265 = vector.shape_cast %264 : vector<1x8x202xf32> to vector<8x202xf32>
    %266 = vector.shape_cast %263 : vector<8x202xf32> to vector<1x8x202xf32>
    tpu.vector_store %arg4[%c2_216, %c0_217, %c0_218], %266 {strides = array<i32>} : memref<4x8x202xf32, #tpu.memory_space<vmem>>, vector<1x8x202xf32>,
    %c3_219 = arith.constant 3 : index
    %c0_220 = arith.constant 0 : index
    %267 = vector.load %arg3[%c3_219, %c0_220] : memref<4x202xf32, #tpu.memory_space<vmem>>, vector<1x202xf32>
    %c0_221 = arith.constant 0 : index
    %c0_222 = arith.constant 0 : index
    %c0_223 = arith.constant 0 : index
    %268 = vector.load %arg1[%c0_221, %c0_222, %c0_223] : memref<4x8x206xf32, #tpu.memory_space<vmem>>, vector<1x8x202xf32>
    %269 = vector.shape_cast %268 : vector<1x8x202xf32> to vector<8x202xf32>
    %c3_224 = arith.constant 3 : index
    %c0_225 = arith.constant 0 : index
    %c0_226 = arith.constant 0 : index
    %270 = vector.load %arg2[%c3_224, %c0_225, %c0_226] : memref<4x12x202xf32, #tpu.memory_space<vmem>>, vector<1x1x202xf32>
    %271 = vector.shape_cast %270 : vector<1x1x202xf32> to vector<1x202xf32>
    %272 = vector.broadcast %271 : vector<1x202xf32> to vector<8x202xf32>
    %273 = arith.mulf %272, %269 : vector<8x202xf32>
    %274 = vector.broadcast %267 : vector<1x202xf32> to vector<8x202xf32>
    %275 = arith.addf %274, %273 : vector<8x202xf32>
    %c0_227 = arith.constant 0 : index
    %c0_228 = arith.constant 0 : index
    %c2_229 = arith.constant 2 : index
    %276 = vector.load %arg1[%c0_227, %c0_228, %c2_229] : memref<4x8x206xf32, #tpu.memory_space<vmem>>, vector<1x8x202xf32>
    %277 = vector.shape_cast %276 : vector<1x8x202xf32> to vector<8x202xf32>
    %c3_230 = arith.constant 3 : index
    %c1_231 = arith.constant 1 : index
    %c0_232 = arith.constant 0 : index
    %278 = vector.load %arg2[%c3_230, %c1_231, %c0_232] : memref<4x12x202xf32, #tpu.memory_space<vmem>>, vector<1x1x202xf32>
    %279 = vector.shape_cast %278 : vector<1x1x202xf32> to vector<1x202xf32>
    %280 = vector.broadcast %279 : vector<1x202xf32> to vector<8x202xf32>
    %281 = arith.mulf %280, %277 : vector<8x202xf32>
    %282 = arith.addf %275, %281 : vector<8x202xf32>
    %c0_233 = arith.constant 0 : index
    %c0_234 = arith.constant 0 : index
    %c4_235 = arith.constant 4 : index
    %283 = vector.load %arg1[%c0_233, %c0_234, %c4_235] : memref<4x8x206xf32, #tpu.memory_space<vmem>>, vector<1x8x202xf32>
    %284 = vector.shape_cast %283 : vector<1x8x202xf32> to vector<8x202xf32>
    %c3_236 = arith.constant 3 : index
    %c2_237 = arith.constant 2 : index
    %c0_238 = arith.constant 0 : index
    %285 = vector.load %arg2[%c3_236, %c2_237, %c0_238] : memref<4x12x202xf32, #tpu.memory_space<vmem>>, vector<1x1x202xf32>
    %286 = vector.shape_cast %285 : vector<1x1x202xf32> to vector<1x202xf32>
    %287 = vector.broadcast %286 : vector<1x202xf32> to vector<8x202xf32>
    %288 = arith.mulf %287, %284 : vector<8x202xf32>
    %289 = arith.addf %282, %288 : vector<8x202xf32>
    %c1_239 = arith.constant 1 : index
    %c0_240 = arith.constant 0 : index
    %c0_241 = arith.constant 0 : index
    %290 = vector.load %arg1[%c1_239, %c0_240, %c0_241] : memref<4x8x206xf32, #tpu.memory_space<vmem>>, vector<1x8x202xf32>
    %291 = vector.shape_cast %290 : vector<1x8x202xf32> to vector<8x202xf32>
    %c3_242 = arith.constant 3 : index
    %c3_243 = arith.constant 3 : index
    %c0_244 = arith.constant 0 : index
    %292 = vector.load %arg2[%c3_242, %c3_243, %c0_244] : memref<4x12x202xf32, #tpu.memory_space<vmem>>, vector<1x1x202xf32>
    %293 = vector.shape_cast %292 : vector<1x1x202xf32> to vector<1x202xf32>
    %294 = vector.broadcast %293 : vector<1x202xf32> to vector<8x202xf32>
    %295 = arith.mulf %294, %291 : vector<8x202xf32>
    %296 = arith.addf %289, %295 : vector<8x202xf32>
    %c1_245 = arith.constant 1 : index
    %c0_246 = arith.constant 0 : index
    %c2_247 = arith.constant 2 : index
    %297 = vector.load %arg1[%c1_245, %c0_246, %c2_247] : memref<4x8x206xf32, #tpu.memory_space<vmem>>, vector<1x8x202xf32>
    %298 = vector.shape_cast %297 : vector<1x8x202xf32> to vector<8x202xf32>
    %c3_248 = arith.constant 3 : index
    %c4_249 = arith.constant 4 : index
    %c0_250 = arith.constant 0 : index
    %299 = vector.load %arg2[%c3_248, %c4_249, %c0_250] : memref<4x12x202xf32, #tpu.memory_space<vmem>>, vector<1x1x202xf32>
    %300 = vector.shape_cast %299 : vector<1x1x202xf32> to vector<1x202xf32>
    %301 = vector.broadcast %300 : vector<1x202xf32> to vector<8x202xf32>
    %302 = arith.mulf %301, %298 : vector<8x202xf32>
    %303 = arith.addf %296, %302 : vector<8x202xf32>
    %c1_251 = arith.constant 1 : index
    %c0_252 = arith.constant 0 : index
    %c4_253 = arith.constant 4 : index
    %304 = vector.load %arg1[%c1_251, %c0_252, %c4_253] : memref<4x8x206xf32, #tpu.memory_space<vmem>>, vector<1x8x202xf32>
    %305 = vector.shape_cast %304 : vector<1x8x202xf32> to vector<8x202xf32>
    %c3_254 = arith.constant 3 : index
    %c5_255 = arith.constant 5 : index
    %c0_256 = arith.constant 0 : index
    %306 = vector.load %arg2[%c3_254, %c5_255, %c0_256] : memref<4x12x202xf32, #tpu.memory_space<vmem>>, vector<1x1x202xf32>
    %307 = vector.shape_cast %306 : vector<1x1x202xf32> to vector<1x202xf32>
    %308 = vector.broadcast %307 : vector<1x202xf32> to vector<8x202xf32>
    %309 = arith.mulf %308, %305 : vector<8x202xf32>
    %310 = arith.addf %303, %309 : vector<8x202xf32>
    %c2_257 = arith.constant 2 : index
    %c0_258 = arith.constant 0 : index
    %c0_259 = arith.constant 0 : index
    %311 = vector.load %arg1[%c2_257, %c0_258, %c0_259] : memref<4x8x206xf32, #tpu.memory_space<vmem>>, vector<1x8x202xf32>
    %312 = vector.shape_cast %311 : vector<1x8x202xf32> to vector<8x202xf32>
    %c3_260 = arith.constant 3 : index
    %c6_261 = arith.constant 6 : index
    %c0_262 = arith.constant 0 : index
    %313 = vector.load %arg2[%c3_260, %c6_261, %c0_262] : memref<4x12x202xf32, #tpu.memory_space<vmem>>, vector<1x1x202xf32>
    %314 = vector.shape_cast %313 : vector<1x1x202xf32> to vector<1x202xf32>
    %315 = vector.broadcast %314 : vector<1x202xf32> to vector<8x202xf32>
    %316 = arith.mulf %315, %312 : vector<8x202xf32>
    %317 = arith.addf %310, %316 : vector<8x202xf32>
    %c2_263 = arith.constant 2 : index
    %c0_264 = arith.constant 0 : index
    %c2_265 = arith.constant 2 : index
    %318 = vector.load %arg1[%c2_263, %c0_264, %c2_265] : memref<4x8x206xf32, #tpu.memory_space<vmem>>, vector<1x8x202xf32>
    %319 = vector.shape_cast %318 : vector<1x8x202xf32> to vector<8x202xf32>
    %c3_266 = arith.constant 3 : index
    %c7_267 = arith.constant 7 : index
    %c0_268 = arith.constant 0 : index
    %320 = vector.load %arg2[%c3_266, %c7_267, %c0_268] : memref<4x12x202xf32, #tpu.memory_space<vmem>>, vector<1x1x202xf32>
    %321 = vector.shape_cast %320 : vector<1x1x202xf32> to vector<1x202xf32>
    %322 = vector.broadcast %321 : vector<1x202xf32> to vector<8x202xf32>
    %323 = arith.mulf %322, %319 : vector<8x202xf32>
    %324 = arith.addf %317, %323 : vector<8x202xf32>
    %c2_269 = arith.constant 2 : index
    %c0_270 = arith.constant 0 : index
    %c4_271 = arith.constant 4 : index
    %325 = vector.load %arg1[%c2_269, %c0_270, %c4_271] : memref<4x8x206xf32, #tpu.memory_space<vmem>>, vector<1x8x202xf32>
    %326 = vector.shape_cast %325 : vector<1x8x202xf32> to vector<8x202xf32>
    %c3_272 = arith.constant 3 : index
    %c8_273 = arith.constant 8 : index
    %c0_274 = arith.constant 0 : index
    %327 = vector.load %arg2[%c3_272, %c8_273, %c0_274] : memref<4x12x202xf32, #tpu.memory_space<vmem>>, vector<1x1x202xf32>
    %328 = vector.shape_cast %327 : vector<1x1x202xf32> to vector<1x202xf32>
    %329 = vector.broadcast %328 : vector<1x202xf32> to vector<8x202xf32>
    %330 = arith.mulf %329, %326 : vector<8x202xf32>
    %331 = arith.addf %324, %330 : vector<8x202xf32>
    %c3_275 = arith.constant 3 : index
    %c0_276 = arith.constant 0 : index
    %c0_277 = arith.constant 0 : index
    %332 = vector.load %arg1[%c3_275, %c0_276, %c0_277] : memref<4x8x206xf32, #tpu.memory_space<vmem>>, vector<1x8x202xf32>
    %333 = vector.shape_cast %332 : vector<1x8x202xf32> to vector<8x202xf32>
    %c3_278 = arith.constant 3 : index
    %c9_279 = arith.constant 9 : index
    %c0_280 = arith.constant 0 : index
    %334 = vector.load %arg2[%c3_278, %c9_279, %c0_280] : memref<4x12x202xf32, #tpu.memory_space<vmem>>, vector<1x1x202xf32>
    %335 = vector.shape_cast %334 : vector<1x1x202xf32> to vector<1x202xf32>
    %336 = vector.broadcast %335 : vector<1x202xf32> to vector<8x202xf32>
    %337 = arith.mulf %336, %333 : vector<8x202xf32>
    %338 = arith.addf %331, %337 : vector<8x202xf32>
    %c3_281 = arith.constant 3 : index
    %c0_282 = arith.constant 0 : index
    %c2_283 = arith.constant 2 : index
    %339 = vector.load %arg1[%c3_281, %c0_282, %c2_283] : memref<4x8x206xf32, #tpu.memory_space<vmem>>, vector<1x8x202xf32>
    %340 = vector.shape_cast %339 : vector<1x8x202xf32> to vector<8x202xf32>
    %c3_284 = arith.constant 3 : index
    %c10_285 = arith.constant 10 : index
    %c0_286 = arith.constant 0 : index
    %341 = vector.load %arg2[%c3_284, %c10_285, %c0_286] : memref<4x12x202xf32, #tpu.memory_space<vmem>>, vector<1x1x202xf32>
    %342 = vector.shape_cast %341 : vector<1x1x202xf32> to vector<1x202xf32>
    %343 = vector.broadcast %342 : vector<1x202xf32> to vector<8x202xf32>
    %344 = arith.mulf %343, %340 : vector<8x202xf32>
    %345 = arith.addf %338, %344 : vector<8x202xf32>
    %c3_287 = arith.constant 3 : index
    %c0_288 = arith.constant 0 : index
    %c4_289 = arith.constant 4 : index
    %346 = vector.load %arg1[%c3_287, %c0_288, %c4_289] : memref<4x8x206xf32, #tpu.memory_space<vmem>>, vector<1x8x202xf32>
    %347 = vector.shape_cast %346 : vector<1x8x202xf32> to vector<8x202xf32>
    %c3_290 = arith.constant 3 : index
    %c11_291 = arith.constant 11 : index
    %c0_292 = arith.constant 0 : index
    %348 = vector.load %arg2[%c3_290, %c11_291, %c0_292] : memref<4x12x202xf32, #tpu.memory_space<vmem>>, vector<1x1x202xf32>
    %349 = vector.shape_cast %348 : vector<1x1x202xf32> to vector<1x202xf32>
    %350 = vector.broadcast %349 : vector<1x202xf32> to vector<8x202xf32>
    %351 = arith.mulf %350, %347 : vector<8x202xf32>
    %352 = arith.addf %345, %351 : vector<8x202xf32>
    %c3_293 = arith.constant 3 : index
    %c0_294 = arith.constant 0 : index
    %c0_295 = arith.constant 0 : index
    %353 = vector.load %arg4[%c3_293, %c0_294, %c0_295] : memref<4x8x202xf32, #tpu.memory_space<vmem>>, vector<1x8x202xf32>
    %354 = vector.shape_cast %353 : vector<1x8x202xf32> to vector<8x202xf32>
    %355 = vector.shape_cast %352 : vector<8x202xf32> to vector<1x8x202xf32>
    tpu.vector_store %arg4[%c3_293, %c0_294, %c0_295], %355 {strides = array<i32>} : memref<4x8x202xf32, #tpu.memory_space<vmem>>, vector<1x8x202xf32>,
    return
  }
  func.func @transform_0(%arg0: i32) -> (i32, i32, i32) {
    %c0_i32 = arith.constant 0 : i32
    %c0_i32_0 = arith.constant 0 : i32
    %c0_i32_1 = arith.constant 0 : i32
    return %c0_i32, %arg0, %c0_i32_0 : i32, i32, i32
  }
  func.func @transform_1(%arg0: i32) -> (i32, i32, i32) {
    %c0_i32 = arith.constant 0 : i32
    %c0_i32_0 = arith.constant 0 : i32
    %c0_i32_1 = arith.constant 0 : i32
    %c0_i32_2 = arith.constant 0 : i32
    return %c0_i32, %c0_i32_0, %c0_i32_1 : i32, i32, i32
  }
  func.func @transform_2(%arg0: i32) -> (i32, i32) {
    %c0_i32 = arith.constant 0 : i32
    %c0_i32_0 = arith.constant 0 : i32
    %c0_i32_1 = arith.constant 0 : i32
    return %c0_i32, %c0_i32_0 : i32, i32
  }
  func.func @transform_3(%arg0: i32) -> (i32, i32, i32) {
    %c0_i32 = arith.constant 0 : i32
    %c0_i32_0 = arith.constant 0 : i32
    %c0_i32_1 = arith.constant 0 : i32
    return %c0_i32, %arg0, %c0_i32_0 : i32, i32, i32
  }
}

</mosaic_0001>

<bundles_post_ra>
// kernel: tpu_custom_call.1
= control target key start
LH: loop header
LB: loop body
LE: loop exit
PB: predicated region body
PF: predicated region fallthrough
CT: control target
= control target key end

     0   :  { %s1030_s16 = smov 126   ;;  %s1031_s17 = smov 124   ;;  %s1550_s0 = inlined_call_operand.vmem [shape: f32[4,8,206], index: 0, kind: input, shape index: {}]   ;;  %s1551_s1 = inlined_call_operand.vmem [shape: f32[4,12,202], index: 1, kind: input, shape index: {}]   ;;  %s1552_s2 = inlined_call_operand.vmem [shape: f32[4,202], index: 2, kind: input, shape index: {}]   ;;  %s1553_s3 = inlined_call_operand.hbm [shape: f32[4,8,202], index: 3, kind: output, shape index: {}]  }
   0x1   :  { %v1058_v0 = vld [vmem:[%s1550_s0 + $0x10] sm:$0xff]  ;;  %v1063_v1 = vld [vmem:[%s1550_s0] sm:$0xff]  ;;  %v1074_v2 = vld [vmem:[%s1550_s0 + $0x18] sm:$0xff] }
   0x2   :  { %96 = vrot.lane.b32.xlu2 %v1058_v0, %s1030_s16  ;;  %42 = vrot.lane.b32.xlu0 %v1063_v1, %s1030_s16  ;;  %v1079_v3 = vld [vmem:[%s1550_s0 + $0x8] sm:$0xff] }
   0x3   :  { %61 = vrot.lane.b32.xlu1 %v1063_v1, %s1031_s17 }
   0x4   :  { %8 = vsyncpa [#allocation3], 0  ;;  %v1090_v4 = vld [vmem:[%s1550_s0 + $0x20] sm:$0xff]  ;;  %v1101_v5 = vld [vmem:[%s1550_s0 + $0x28] sm:$0xff]  ;;  %vm46_vm0 = vcmask 1031168   ;;  %vm65_vm1 = vcmask 1014784  }
   0x5   :  { %v1112_v6 = vld [vmem:[%s1550_s0 + $0x30] sm:$0xff]  ;;  %v1117_v7 = vld [vmem:[%s1550_s0 + $0x38] sm:$0xff]  ;;  %v18_v11 = vld [vmem:[%s1551_s1] ss:$8 sm:$0x3]  ;;  %vm230_vm2 = vcmask 605184  }
   0x6   :  { %v21_v12 = vperm.slane %v18_v11, 1  ;;  %v20_v13 = vperm.slane %v18_v11, 0  ;;  %v15_v14 = vld [vmem:[%s1552_s2] ss:$4 sm:$0x3]  ;;  %s880_s25 = sshll.u32 %s1553_s3, 4  ;;  %s881_s25 = int_to_ptr.hbm [resolvable:$true] %s880_s25 }
   0x7   :  { %v925_v18 = vld [vmem:[%s1551_s1 + $0x1] ss:$8 sm:$0x3]  ;;  %v926_v20 = vld [vmem:[%s1551_s1 + $0x2] ss:$8 sm:$0x3] }
   0x8   :  { %v25_v19 = vmul.f32 %v21_v12, %v1079_v3  ;;  %v28_v21 = vperm.slane %v15_v14, 1  ;;  %v24_v22 = vmul.f32 %v20_v13, %v1063_v1  ;;  %v27_v23 = vperm.slane %v15_v14, 0  ;;  %v929_v25 = vld [vmem:[%s1551_s1 + $0x3] ss:$8 sm:$0x3]  ;;  %s1033_s26 = smov 256  }
   0x9   :  { %v37_v24 = vperm.slane %v925_v18, 1  ;;  %v58_v26 = vperm.slane %v926_v20, 1  ;;  %v36_v27 = vperm.slane %v925_v18, 0  ;;  %v57_v30 = vperm.slane %v926_v20, 0  ;;  %s1034_s27 = smov 16  }
   0xa   :  { %98 = vrot.lane.b32.xlu2 %v1074_v2, %s1030_s16  ;;  %44 = vrot.lane.b32.xlu0 %v1079_v3, %s1030_s16  ;;  %v32_v28 = vadd.f32 %v28_v21, %v25_v19  ;;  %v31_v29 = vadd.f32 %v27_v23, %v24_v22  ;;  %v80_v32 = vperm.slane %v929_v25, 1  ;;  %v79_v36 = vperm.slane %v929_v25, 0  ;;  %v930_v42 = vld [vmem:[%s1551_s1 + $0x4] ss:$8 sm:$0x3] }
   0xb   :  { %63 = vrot.lane.b32.xlu1 %v1079_v3, %s1031_s17  ;;  %v91_v46 = vperm.slane %v930_v42, 1  ;;  %v931_v50 = vld [vmem:[%s1551_s1 + $0x5] ss:$8 sm:$0x3]  ;;  %v90_v51 = vperm.slane %v930_v42, 0 }
   0xc   :  { %v84_v45 = vmul.f32 %v1074_v2, %v80_v32  ;;  %v83_v48 = vmul.f32 %v1058_v0, %v79_v36  ;;  %v111_v55 = vperm.slane %v931_v50, 1  ;;  %v934_v58 = vld [vmem:[%s1551_s1 + $0x6] ss:$8 sm:$0x3]  ;;  %v110_v59 = vperm.slane %v931_v50, 0 }
   0xd   :  { %v935_v11 = vld [vmem:[%s1551_s1 + $0x7] ss:$8 sm:$0x3]  ;;  %v131_v13 = vperm.slane %v934_v58, 0 }
   0xe   :  { %v936_v18 = vld [vmem:[%s1551_s1 + $0x10] ss:$8 sm:$0x3]  ;;  %v142_v19 = vperm.slane %v935_v11, 0 }
   0xf   :  { %v135_v25 = vmul.f32 %v1090_v4, %v131_v13 }
  0x12   :  { %148 = vrot.lane.b32.xlu2 %v1090_v4, %s1030_s16  ;;  %114 = vrot.lane.b32.xlu0 %v1058_v0, %s1031_s17 }
  0x13   :  { %116 = vrot.lane.b32.xlu1 %v1074_v2, %s1031_s17 }
  0x1a   :  { %168 = vrot.lane.b32.xlu2 %v1101_v5, %s1031_s17  ;;  %150 = vrot.lane.b32.xlu0 %v1101_v5, %s1030_s16 }
  0x1b   :  { %166 = vrot.lane.b32.xlu1 %v1090_v4, %s1031_s17 }
  0x22   :  { %218 = vrot.lane.b32.xlu2 %v1112_v6, %s1031_s17  ;;  %200 = vrot.lane.b32.xlu0 %v1112_v6, %s1030_s16 }
  0x23   :  { %202 = vrot.lane.b32.xlu1 %v1117_v7, %s1030_s16 }
  0x2a   :  { %263 = vrot.lane.b32.xlu2 %v1079_v3, %s1030_s16  ;;  %220 = vrot.lane.b32.xlu0 %v1117_v7, %s1031_s17 }
  0x2b   :  { %261 = vrot.lane.b32.xlu1 %v1063_v1, %s1030_s16 }
  0x32   :  { %312 = vrot.lane.b32.xlu2 %v1058_v0, %s1030_s16  ;;  %279 = vrot.lane.b32.xlu0 %v1063_v1, %s1031_s17 }
  0x33   :  { %281 = vrot.lane.b32.xlu1 %v1079_v3, %s1031_s17 }
  0x3a   :  { %332 = vrot.lane.b32.xlu2 %v1074_v2, %s1031_s17  ;;  %314 = vrot.lane.b32.xlu0 %v1074_v2, %s1030_s16 }
  0x3b   :  { %330 = vrot.lane.b32.xlu1 %v1058_v0, %s1031_s17 }
  0x42   :  { %381 = vrot.lane.b32.xlu2 %v1090_v4, %s1031_s17  ;;  %363 = vrot.lane.b32.xlu0 %v1090_v4, %s1030_s16 }
  0x43   :  { %365 = vrot.lane.b32.xlu1 %v1101_v5, %s1030_s16 }
  0x4a   :  { %416 = vrot.lane.b32.xlu2 %v1117_v7, %s1030_s16  ;;  %383 = vrot.lane.b32.xlu0 %v1101_v5, %s1031_s17 }
  0x4b   :  { %414 = vrot.lane.b32.xlu1 %v1112_v6, %s1030_s16 }
  0x52   :  { %475 = vrot.lane.b32.xlu2 %v1063_v1, %s1030_s16  ;;  %432 = vrot.lane.b32.xlu0 %v1112_v6, %s1031_s17 }
  0x53   :  { %434 = vrot.lane.b32.xlu1 %v1117_v7, %s1031_s17 }
  0x5a   :  { %495 = vrot.lane.b32.xlu2 %v1079_v3, %s1031_s17  ;;  %477 = vrot.lane.b32.xlu0 %v1079_v3, %s1030_s16 }
  0x5b   :  { %493 = vrot.lane.b32.xlu1 %v1063_v1, %s1031_s17 }
  0x5c   :  { %v1167_v8 = vpop.permute.xlu2 %96 }
  0x62   :  { %544 = vrot.lane.b32.xlu2 %v1058_v0, %s1031_s17  ;;  %526 = vrot.lane.b32.xlu0 %v1058_v0, %s1030_s16 }
  0x63   :  { %528 = vrot.lane.b32.xlu1 %v1074_v2, %s1030_s16 }
  0x64   :  { %v99_v9 = vpop.permute.xlu2 %98 }
  0x65   :  { %v100_v53 = vsel %vm46_vm0, %v1167_v8, %v99_v9  ;;  %v104_v54 = vmul.f32 %v99_v9, %v91_v46  ;;  %v132_v8 = vperm.slane %v934_v58, 1 }
  0x66   :  { %v103_v62 = vmul.f32 %v100_v53, %v90_v51 }
  0x67   :  { %v136_v21 = vmul.f32 %v1101_v5, %v132_v8 }
  0x6a   :  { %579 = vrot.lane.b32.xlu2 %v1101_v5, %s1030_s16  ;;  %546 = vrot.lane.b32.xlu0 %v1074_v2, %s1031_s17 }
  0x6b   :  { %577 = vrot.lane.b32.xlu1 %v1090_v4, %s1030_s16 }
  0x6c   :  { %v1181_v10 = vpop.permute.xlu2 %148 }
  0x72   :  { %691 = vrot.lane.b32.xlu2 %v1079_v3, %s1030_s16  ;;  %595 = vrot.lane.b32.xlu0 %v1090_v4, %s1031_s17 }
  0x73   :  { %689 = vrot.lane.b32.xlu1 %v1063_v1, %s1030_s16 }
  0x74   :  { %v1195_v15 = vpop.permute.xlu2 %168  ;;  %v43_v16 = vpop.permute.xlu0 %42 }
  0x75   :  { %v62_v17 = vpop.permute.xlu1 %61 }
  0x7a   :  { %740 = vrot.lane.b32.xlu2 %v1058_v0, %s1030_s16  ;;  %707 = vrot.lane.b32.xlu0 %v1063_v1, %s1031_s17 }
  0x7b   :  { %709 = vrot.lane.b32.xlu1 %v1079_v3, %s1031_s17 }
  0x7c   :  { %v45_v31 = vpop.permute.xlu0 %44  ;;  %v1215_v37 = vpop.permute.xlu2 %218 }
  0x7d   :  { %v64_v33 = vpop.permute.xlu1 %63  ;;  %v47_v34 = vsel %vm46_vm0, %v43_v16, %v45_v31  ;;  %v51_v35 = vmul.f32 %v45_v31, %v37_v24 }
  0x7e   :  { %v66_v38 = vsel %vm65_vm1, %v62_v17, %v64_v33  ;;  %v70_v39 = vmul.f32 %v64_v33, %v58_v26  ;;  %v50_v40 = vmul.f32 %v47_v34, %v36_v27  ;;  %v143_v17 = vperm.slane %v935_v11, 1 }
  0x7f   :  { %v53_v41 = vadd.f32 %v51_v35, %v32_v28  ;;  %v69_v43 = vmul.f32 %v66_v38, %v57_v30  ;;  %v163_v27 = vperm.slane %v936_v18, 1  ;;  %v162_v30 = vperm.slane %v936_v18, 0 }
  0x80   :  { %v52_v44 = vadd.f32 %v50_v40, %v31_v29  ;;  %v939_v29 = vld [vmem:[%s1551_s1 + $0x11] ss:$8 sm:$0x3] }
  0x81   :  { %v72_v47 = vadd.f32 %v70_v39, %v53_v41  ;;  %v184_v36 = vperm.slane %v939_v29, 1  ;;  %v174_v38 = vmul.f32 %v1195_v15, %v163_v27  ;;  %v183_v40 = vperm.slane %v939_v29, 0 }
  0x82   :  { %v71_v49 = vadd.f32 %v69_v43, %v52_v44  ;;  %760 = vrot.lane.b32.xlu2 %v1074_v2, %s1031_s17  ;;  %742 = vrot.lane.b32.xlu0 %v1074_v2, %s1030_s16 }
  0x83   :  { %758 = vrot.lane.b32.xlu1 %v1058_v0, %s1031_s17  ;;  %v86_v57 = vadd.f32 %v84_v45, %v72_v47  ;;  %v941_v47 = vld [vmem:[%s1551_s1 + $0x13] ss:$8 sm:$0x3]  ;;  %v187_v50 = vmul.f32 %v1112_v6, %v183_v40 }
  0x84   :  { %v115_v52 = vpop.permute.xlu0 %114  ;;  %v85_v60 = vadd.f32 %v83_v48, %v71_v49  ;;  %v1238_v63 = vpop.permute.xlu2 %263  ;;  %v188_v48 = vmul.f32 %v1117_v7, %v184_v36  ;;  %v215_v53 = vperm.slane %v941_v47, 1 }
  0x85   :  { %v117_v56 = vpop.permute.xlu1 %116  ;;  %v106_v9 = vadd.f32 %v104_v54, %v86_v57  ;;  %v943_v54 = vld [vmem:[%s1551_s1 + $0x20] ss:$8 sm:$0x3] }
  0x86   :  { %v118_v61 = vsel %vm65_vm1, %v115_v52, %v117_v56  ;;  %v122_v12 = vmul.f32 %v117_v56, %v111_v55  ;;  %v105_v14 = vadd.f32 %v103_v62, %v85_v60  ;;  %v214_v56 = vperm.slane %v941_v47, 0  ;;  %v942_v62 = vld [vmem:[%s1552_s2 + $0x1] ss:$4 sm:$0x3] }
  0x87   :  { %v121_v16 = vmul.f32 %v118_v61, %v110_v59  ;;  %v240_v61 = vperm.slane %v943_v54, 1  ;;  %v239_v13 = vperm.slane %v943_v54, 0 }
  0x88   :  { %v124_v22 = vadd.f32 %v122_v12, %v106_v9 }
  0x89   :  { %v123_v26 = vadd.f32 %v121_v16, %v105_v14  ;;  %v944_v14 = vld [vmem:[%s1551_s1 + $0x21] ss:$8 sm:$0x3] }
  0x8a   :  { %597 = vrot.lane.b32.xlu2 %v1101_v5, %s1031_s17  ;;  %791 = vrot.lane.b32.xlu0 %v1090_v4, %s1030_s16  ;;  %v138_v33 = vadd.f32 %v136_v21, %v124_v22  ;;  %v247_v21 = vperm.slane %v942_v62, 1  ;;  %v256_v22 = vperm.slane %v944_v14, 1 }
  0x8b   :  { %793 = vrot.lane.b32.xlu1 %v1101_v5, %s1030_s16  ;;  %v137_v35 = vadd.f32 %v135_v25, %v123_v26  ;;  %v945_v25 = vld [vmem:[%s1551_s1 + $0x22] ss:$8 sm:$0x3] }
  0x8c   :  { %v151_v20 = vpop.permute.xlu0 %150  ;;  %v1261_v34 = vpop.permute.xlu2 %312  ;;  %v269_v29 = vmul.f32 %v1238_v63, %v256_v22  ;;  %v275_v36 = vperm.slane %v945_v25, 0 }
  0x8d   :  { %v167_v23 = vpop.permute.xlu1 %166  ;;  %v152_v24 = vsel %vm46_vm0, %v1181_v10, %v151_v20  ;;  %v156_v28 = vmul.f32 %v151_v20, %v143_v17  ;;  %v940_v10 = vld [vmem:[%s1551_s1 + $0x12] ss:$8 sm:$0x3]  ;;  %v244_v20 = vmul.f32 %v240_v61, %v1079_v3 }
  0x8e   :  { %v155_v31 = vmul.f32 %v152_v24, %v142_v19  ;;  %v170_v32 = vsel %vm65_vm1, %v167_v23, %v1195_v15  ;;  %v195_v44 = vperm.slane %v940_v10, 1  ;;  %v194_v46 = vperm.slane %v940_v10, 0 }
  0x8f   :  { %v158_v39 = vadd.f32 %v156_v28, %v138_v33  ;;  %v173_v41 = vmul.f32 %v170_v32, %v162_v30  ;;  %v243_v23 = vmul.f32 %v239_v13, %v1063_v1  ;;  %v255_v24 = vperm.slane %v944_v14, 0  ;;  %v948_v33 = vld [vmem:[%s1551_s1 + $0x23] ss:$8 sm:$0x3] }
  0x90   :  { %v157_v42 = vadd.f32 %v155_v31, %v137_v35  ;;  %v251_v28 = vadd.f32 %v247_v21, %v244_v20  ;;  %v276_v30 = vperm.slane %v945_v25, 1  ;;  %v296_v40 = vperm.slane %v948_v33, 1  ;;  %v955_v21 = vld [vmem:[%s1551_s1 + $0x30] ss:$8 sm:$0x3] }
  0x91   :  { %v176_v49 = vadd.f32 %v174_v38, %v158_v39  ;;  %v949_v39 = vld [vmem:[%s1551_s1 + $0x24] ss:$8 sm:$0x3] }
  0x92   :  { %809 = vrot.lane.b32.xlu0 %v1090_v4, %s1031_s17  ;;  %628 = vrot.lane.b32.xlu2 %v1112_v6, %s1030_s16  ;;  %v175_v51 = vadd.f32 %v173_v41, %v157_v42  ;;  %v271_v41 = vadd.f32 %v269_v29, %v251_v28  ;;  %v295_v42 = vperm.slane %v948_v33, 0  ;;  %v306_v47 = vperm.slane %v949_v39, 0  ;;  %v959_v33 = vld [vmem:[%s1551_s1 + $0x32] ss:$8 sm:$0x3] }
  0x93   :  { %811 = vrot.lane.b32.xlu1 %v1101_v5, %s1031_s17  ;;  %v190_v57 = vadd.f32 %v188_v48, %v176_v49  ;;  %v300_v49 = vmul.f32 %v1074_v2, %v296_v40 }
  0x94   :  { %v201_v43 = vpop.permute.xlu0 %200  ;;  %v1288_v58 = vpop.permute.xlu2 %332  ;;  %v189_v59 = vadd.f32 %v187_v50, %v175_v51 }
  0x95   :  { %v203_v45 = vpop.permute.xlu1 %202 }
  0x96   :  { %v204_v15 = vsel %vm46_vm0, %v201_v43, %v203_v45  ;;  %v208_v52 = vmul.f32 %v203_v45, %v195_v44  ;;  %v307_v45 = vperm.slane %v949_v39, 1 }
  0x97   :  { %v207_v55 = vmul.f32 %v204_v15, %v194_v46  ;;  %v950_v46 = vld [vmem:[%s1551_s1 + $0x25] ss:$8 sm:$0x3] }
  0x98   :  { %v210_v11 = vadd.f32 %v208_v52, %v190_v57  ;;  %v299_v52 = vmul.f32 %v1058_v0, %v295_v42  ;;  %v327_v54 = vperm.slane %v950_v46, 1 }
  0x99   :  { %v209_v16 = vadd.f32 %v207_v55, %v189_v59  ;;  %v326_v59 = vperm.slane %v950_v46, 0 }
  0x9a   :  { %630 = vrot.lane.b32.xlu0 %v1117_v7, %s1030_s16  ;;  %844 = vrot.lane.b32.xlu2 %v1117_v7, %s1030_s16 }
  0x9b   :  { %842 = vrot.lane.b32.xlu1 %v1112_v6, %s1030_s16 }
  0x9c   :  { %v221_v60 = vpop.permute.xlu0 %220  ;;  %v1316_v35 = vpop.permute.xlu2 %381 }
  0x9d   :  { %v262_v8 = vpop.permute.xlu1 %261  ;;  %v222_v9 = vsel %vm65_vm1, %v1215_v37, %v221_v60  ;;  %v226_v12 = vmul.f32 %v221_v60, %v215_v53  ;;  %v246_v37 = vperm.slane %v942_v62, 0 }
  0x9e   :  { %v225_v17 = vmul.f32 %v222_v9, %v214_v56  ;;  %v265_v26 = vsel %vm46_vm0, %v262_v8, %v1238_v63  ;;  %v953_v56 = vld [vmem:[%s1551_s1 + $0x26] ss:$8 sm:$0x3]  ;;  %v338_v9 = vmul.f32 %v1288_v58, %v327_v54 }
  0x9f   :  { %v228_v18 = vadd.f32 %v226_v12, %v210_v11  ;;  %v250_v32 = vadd.f32 %v246_v37, %v243_v23  ;;  %v268_v10 = vmul.f32 %v265_v26, %v255_v24  ;;  %v347_v8 = vperm.slane %v953_v56, 1  ;;  %v958_v23 = vld [vmem:[%s1551_s1 + $0x31] ss:$8 sm:$0x3] }
  0xa0   :  { %v227_v19 = vadd.f32 %v225_v17, %v209_v16  ;;  %v346_v13 = vperm.slane %v953_v56, 0  ;;  %v398_v28 = vperm.slane %v958_v23, 1 }
  0xa1   :  { %231 = vst.msk [vmem:[#allocation2 + $0x8] sm:$0xff] %vm230_vm2, %v228_v18  ;;  %v270_v43 = vadd.f32 %v268_v10, %v250_v32  ;;  %v351_v22 = vmul.f32 %v1101_v5, %v347_v8  ;;  %v397_v32 = vperm.slane %v958_v23, 0 }
  0xa2   :  { %229 = vst [vmem:[#allocation2] sm:$0xff] %v227_v19  ;;  %646 = vrot.lane.b32.xlu0 %v1112_v6, %s1031_s17  ;;  %860 = vrot.lane.b32.xlu2 %v1112_v6, %s1031_s17  ;;  %v350_v24 = vmul.f32 %v1090_v4, %v346_v13  ;;  %v402_v42 = vmul.f32 %v1117_v7, %v398_v28  ;;  %v981_v28 = vld [vmem:[%s1551_s1 + $0x60] ss:$8 sm:$0x3] }
  0xa3   :  { %648 = vrot.lane.b32.xlu1 %v1117_v7, %s1031_s17  ;;  %v401_v46 = vmul.f32 %v1112_v6, %v397_v32  ;;  %v967_v32 = vld [vmem:[%s1551_s1 + $0x43] ss:$8 sm:$0x3] }
  0xa4   :  { %v280_v27 = vpop.permute.xlu0 %279  ;;  %v417_v57 = vpop.permute.xlu2 %416 }
  0xa5   :  { %v282_v31 = vpop.permute.xlu1 %281 }
  0xa6   :  { %v283_v38 = vsel %vm65_vm1, %v280_v27, %v282_v31  ;;  %v287_v63 = vmul.f32 %v282_v31, %v276_v30  ;;  %v378_v27 = vperm.slane %v955_v21, 1  ;;  %v377_v31 = vperm.slane %v955_v21, 0 }
  0xa7   :  { %v286_v44 = vmul.f32 %v283_v38, %v275_v36 }
  0xa8   :  { %v289_v15 = vadd.f32 %v287_v63, %v271_v41 }
  0xa9   :  { %v288_v53 = vadd.f32 %v286_v44, %v270_v43  ;;  %v409_v43 = vperm.slane %v959_v33, 1 }
  0xaa   :  { %862 = vrot.lane.b32.xlu0 %v1117_v7, %s1031_s17  ;;  %v302_v62 = vadd.f32 %v300_v49, %v289_v15  ;;  %v960_v49 = vld [vmem:[%s1551_s1 + $0x33] ss:$8 sm:$0x3] }
  0xab   :  { %v301_v11 = vadd.f32 %v299_v52, %v288_v53 }
  0xac   :  { %v315_v48 = vpop.permute.xlu0 %314  ;;  %v1349_v29 = vpop.permute.xlu2 %475 }
  0xad   :  { %v331_v50 = vpop.permute.xlu1 %330  ;;  %v316_v51 = vsel %vm46_vm0, %v1261_v34, %v315_v48  ;;  %v320_v55 = vmul.f32 %v315_v48, %v307_v45  ;;  %v954_v34 = vld [vmem:[%s1551_s1 + $0x27] ss:$8 sm:$0x3] }
  0xae   :  { %v319_v60 = vmul.f32 %v316_v51, %v306_v47  ;;  %v334_v61 = vsel %vm65_vm1, %v331_v50, %v1288_v58  ;;  %v358_v18 = vperm.slane %v954_v34, 1  ;;  %v357_v20 = vperm.slane %v954_v34, 0 }
  0xaf   :  { %v322_v12 = vadd.f32 %v320_v55, %v302_v62  ;;  %v337_v14 = vmul.f32 %v334_v61, %v326_v59  ;;  %v408_v47 = vperm.slane %v959_v33, 0  ;;  %v422_v51 = vmul.f32 %v417_v57, %v409_v43 }
  0xb0   :  { %v321_v16 = vadd.f32 %v319_v60, %v301_v11  ;;  %v428_v55 = vperm.slane %v960_v49, 0  ;;  %v668_v33 = vperm.slane %v981_v28, 1  ;;  %v509_v43 = vperm.slane %v967_v32, 0 }
  0xb1   :  { %v340_v37 = vadd.f32 %v338_v9, %v322_v12 }
  0xb2   :  { %v339_v25 = vadd.f32 %v337_v14, %v321_v16 }
  0xb3   :  { %v353_v10 = vadd.f32 %v351_v22, %v340_v37  ;;  %v962_v37 = vld [vmem:[%s1551_s1 + $0x40] ss:$8 sm:$0x3] }
  0xb4   :  { %v364_v17 = vpop.permute.xlu0 %363  ;;  %v352_v36 = vadd.f32 %v350_v24, %v339_v25  ;;  %v1362_v56 = vpop.permute.xlu2 %495  ;;  %v961_v25 = vld [vmem:[%s1552_s2 + $0x2] ss:$4 sm:$0x3] }
  0xb5   :  { %v366_v19 = vpop.permute.xlu1 %365 }
  0xb6   :  { %v367_v58 = vsel %vm46_vm0, %v364_v17, %v366_v19  ;;  %v371_v26 = vmul.f32 %v366_v19, %v358_v18 }
  0xb7   :  { %v370_v30 = vmul.f32 %v367_v58, %v357_v20 }
  0xb8   :  { %v373_v39 = vadd.f32 %v371_v26, %v353_v10 }
  0xb9   :  { %v372_v44 = vadd.f32 %v370_v30, %v352_v36  ;;  %v453_v30 = vperm.slane %v962_v37, 0  ;;  %v980_v36 = vld [vmem:[%s1552_s2 + $0x3] ss:$4 sm:$0x3] }
  0xbc   :  { %v384_v38 = vpop.permute.xlu0 %383  ;;  %v1366_v14 = vpop.permute.xlu2 %544 }
  0xbd   :  { %v415_v40 = vpop.permute.xlu1 %414  ;;  %v385_v41 = vsel %vm65_vm1, %v1316_v35, %v384_v38  ;;  %v389_v63 = vmul.f32 %v384_v38, %v378_v27  ;;  %v429_v35 = vperm.slane %v960_v49, 1  ;;  %v454_v27 = vperm.slane %v962_v37, 1  ;;  %v968_v37 = vld [vmem:[%s1551_s1 + $0x44] ss:$8 sm:$0x3] }
  0xbe   :  { %v388_v45 = vmul.f32 %v385_v41, %v377_v31  ;;  %v418_v15 = vsel %vm46_vm0, %v415_v40, %v417_v57  ;;  %v963_v31 = vld [vmem:[%s1551_s1 + $0x41] ss:$8 sm:$0x3]  ;;  %v461_v38 = vperm.slane %v961_v25, 1  ;;  %v457_v40 = vmul.f32 %v453_v30, %v1063_v1 }
  0xbf   :  { %v391_v48 = vadd.f32 %v389_v63, %v373_v39  ;;  %v421_v53 = vmul.f32 %v418_v15, %v408_v47  ;;  %v458_v10 = vmul.f32 %v454_v27, %v1079_v3  ;;  %v470_v39 = vperm.slane %v963_v31, 1  ;;  %v964_v63 = vld [vmem:[%s1551_s1 + $0x42] ss:$8 sm:$0x3] }
  0xc0   :  { %v390_v50 = vadd.f32 %v388_v45, %v372_v44  ;;  %v460_v41 = vperm.slane %v961_v25, 0  ;;  %v982_v44 = vld [vmem:[%s1551_s1 + $0x61] ss:$8 sm:$0x3]  ;;  %v510_v47 = vperm.slane %v967_v32, 1  ;;  %v672_v49 = vmul.f32 %v668_v33, %v1079_v3 }
  0xc1   :  { %v404_v52 = vadd.f32 %v402_v42, %v391_v48  ;;  %v469_v42 = vperm.slane %v963_v31, 0  ;;  %v972_v48 = vld [vmem:[%s1551_s1 + $0x46] ss:$8 sm:$0x3]  ;;  %v667_v15 = vperm.slane %v981_v28, 0  ;;  %v683_v28 = vperm.slane %v982_v44, 0 }
  0xc2   :  { %v403_v54 = vadd.f32 %v401_v46, %v390_v50  ;;  %v675_v50 = vperm.slane %v980_v36, 1 }
  0xc3   :  { %v424_v61 = vadd.f32 %v422_v51, %v404_v52  ;;  %v490_v52 = vperm.slane %v964_v63, 1 }
  0xc4   :  { %v433_v59 = vpop.permute.xlu0 %432  ;;  %v423_v34 = vadd.f32 %v421_v53, %v403_v54  ;;  %v1372_v18 = vpop.permute.xlu2 %579 }
  0xc5   :  { %v435_v60 = vpop.permute.xlu1 %434  ;;  %v501_v25 = vmul.f32 %v1362_v56, %v490_v52 }
  0xc6   :  { %v440_v62 = vmul.f32 %v435_v60, %v429_v35  ;;  %v436_v11 = vsel %vm65_vm1, %v433_v59, %v435_v60  ;;  %v465_v35 = vadd.f32 %v461_v38, %v458_v10  ;;  %v489_v59 = vperm.slane %v964_v63, 0 }
  0xc7   :  { %v439_v8 = vmul.f32 %v436_v11, %v428_v55  ;;  %v464_v55 = vadd.f32 %v460_v41, %v457_v40  ;;  %v674_v11 = vperm.slane %v980_v36, 0  ;;  %v560_v10 = vperm.slane %v972_v48, 0 }
  0xc8   :  { %v442_v9 = vadd.f32 %v440_v62, %v424_v61  ;;  %v983_v61 = vld [vmem:[%s1551_s1 + $0x62] ss:$8 sm:$0x3]  ;;  %v561_v62 = vperm.slane %v972_v48, 1  ;;  %v520_v63 = vperm.slane %v968_v37, 0 }
  0xc9   :  { %v441_v12 = vadd.f32 %v439_v8, %v423_v34  ;;  %v513_v34 = vmul.f32 %v1058_v0, %v509_v43  ;;  %v514_v8 = vmul.f32 %v1074_v2, %v510_v47  ;;  %v704_v30 = vperm.slane %v983_v61, 1  ;;  %v987_v48 = vld [vmem:[%s1551_s1 + $0x64] ss:$8 sm:$0x3] }
  0xca   :  { %445 = vst.msk [vmem:[#allocation2 + $0x18] sm:$0xff] %vm230_vm2, %v442_v9  ;;  %v671_v9 = vmul.f32 %v667_v15, %v1063_v1  ;;  %v703_v47 = vperm.slane %v983_v61, 0 }
  0xcb   :  { %444 = vst [vmem:[#allocation2 + $0x10] sm:$0xff] %v441_v12  ;;  %v986_v12 = vld [vmem:[%s1551_s1 + $0x63] ss:$8 sm:$0x3] }
  0xcc   :  { %v478_v57 = vpop.permute.xlu0 %477  ;;  %v692_v21 = vpop.permute.xlu2 %691  ;;  %v723_v36 = vperm.slane %v986_v12, 0  ;;  %v724_v38 = vperm.slane %v986_v12, 1  ;;  %v678_v41 = vadd.f32 %v674_v11, %v671_v9  ;;  %v735_v11 = vperm.slane %v987_v48, 1 }
  0xcd   :  { %v494_v13 = vpop.permute.xlu1 %493  ;;  %v479_v45 = vsel %vm46_vm0, %v1349_v29, %v478_v57  ;;  %v483_v53 = vmul.f32 %v478_v57, %v470_v39  ;;  %v684_v29 = vperm.slane %v982_v44, 1  ;;  %v679_v57 = vadd.f32 %v675_v50, %v672_v49 }
  0xce   :  { %v482_v60 = vmul.f32 %v479_v45, %v469_v42  ;;  %v497_v3 = vsel %vm65_vm1, %v494_v13, %v1362_v56  ;;  %v969_v13 = vld [vmem:[%s1551_s1 + $0x45] ss:$8 sm:$0x3]  ;;  %v521_v39 = vperm.slane %v968_v37, 1  ;;  %v728_v9 = vmul.f32 %v1074_v2, %v724_v38 }
  0xcf   :  { %v485_v27 = vadd.f32 %v483_v53, %v465_v35  ;;  %v697_v31 = vmul.f32 %v692_v21, %v684_v29  ;;  %v500_v1 = vmul.f32 %v497_v3, %v489_v59  ;;  %v1448_v56 = vld [vmem:[%s1551_s1 + $0x66] ss:$8 sm:$0x3]  ;;  %v540_v42 = vperm.slane %v969_v13, 0 }
  0xd0   :  { %v484_v32 = vadd.f32 %v482_v60, %v464_v55  ;;  %v541_v43 = vperm.slane %v969_v13, 1  ;;  %v565_v35 = vmul.f32 %v1101_v5, %v561_v62  ;;  %v775_v53 = vperm.slane %v1448_v56, 1 }
  0xd1   :  { %v503_v45 = vadd.f32 %v501_v25, %v485_v27  ;;  %v699_v49 = vadd.f32 %v697_v31, %v679_v57  ;;  %v564_v59 = vmul.f32 %v1090_v4, %v560_v10  ;;  %v727_v60 = vmul.f32 %v1058_v0, %v723_v36  ;;  %v973_v0 = vld [vmem:[%s1551_s1 + $0x47] ss:$8 sm:$0x3] }
  0xd2   :  { %v502_v15 = vadd.f32 %v500_v1, %v484_v32  ;;  %v1482_v37 = vmul.f32 %v1101_v5, %v775_v53  ;;  %v734_v27 = vperm.slane %v987_v48, 0  ;;  %v572_v32 = vperm.slane %v973_v0, 1 }
  0xd3   :  { %v516_v3 = vadd.f32 %v514_v8, %v503_v45  ;;  %v571_v38 = vperm.slane %v973_v0, 0 }
  0xd4   :  { %v1368_v16 = vpop.permute.xlu0 %526  ;;  %v1383_v58 = vpop.permute.xlu2 %740  ;;  %v515_v12 = vadd.f32 %v513_v34, %v502_v15  ;;  %v585_v48 = vmul.f32 %v1372_v18, %v572_v32 }
  0xd5   :  { %v1370_v17 = vpop.permute.xlu1 %528 }
  0xdc   :  { %v1374_v19 = vpop.permute.xlu0 %546  ;;  %v1422_v54 = vpop.permute.xlu2 %760 }
  0xdd   :  { %v1376_v20 = vpop.permute.xlu1 %577  ;;  %v548_v55 = vsel %vm65_vm1, %v1366_v14, %v1374_v19  ;;  %v977_v14 = vld [vmem:[%s1551_s1 + $0x51] ss:$8 sm:$0x3] }
  0xde   :  { %v551_v8 = vmul.f32 %v548_v55, %v540_v42  ;;  %v612_v1 = vperm.slane %v977_v14, 1  ;;  %v611_v36 = vperm.slane %v977_v14, 0  ;;  %v978_v55 = vld [vmem:[%s1551_s1 + $0x52] ss:$8 sm:$0x3] }
  0xe4   :  { %v1378_v22 = vpop.permute.xlu0 %595  ;;  %v598_v29 = vpop.permute.xlu2 %597 }
  0xe5   :  { %v690_v23 = vpop.permute.xlu1 %689  ;;  %v599_v15 = vsel %vm65_vm1, %v1378_v22, %v598_v29 }
  0xe6   :  { %v693_v33 = vsel %vm46_vm0, %v690_v23, %v692_v21  ;;  %v530_v21 = vsel %vm46_vm0, %v1368_v16, %v1370_v17  ;;  %v534_v16 = vmul.f32 %v1370_v17, %v521_v39 }
  0xe7   :  { %v696_v23 = vmul.f32 %v693_v33, %v683_v28  ;;  %v533_v61 = vmul.f32 %v530_v21, %v520_v63 }
  0xe8   :  { %v536_v25 = vadd.f32 %v534_v16, %v516_v3 }
  0xe9   :  { %v698_v62 = vadd.f32 %v696_v23, %v678_v41  ;;  %v535_v2 = vadd.f32 %v533_v61, %v515_v12  ;;  %v622_v12 = vperm.slane %v978_v55, 0 }
  0xeb   :  { %v553_v39 = vadd.f32 %v551_v8, %v535_v2  ;;  %v979_v8 = vld [vmem:[%s1551_s1 + $0x53] ss:$8 sm:$0x3] }
  0xec   :  { %v1385_v24 = vpop.permute.xlu0 %707  ;;  %v643_v32 = vperm.slane %v979_v8, 1 }
  0xed   :  { %v1390_v26 = vpop.permute.xlu1 %709 }
  0xee   :  { %v715_v50 = vmul.f32 %v1390_v26, %v704_v30  ;;  %v711_v52 = vsel %vm65_vm1, %v1385_v24, %v1390_v26  ;;  %v988_v24 = vld [vmem:[%s1551_s1 + $0x65] ss:$8 sm:$0x3]  ;;  %v552_v26 = vmul.f32 %v1374_v19, %v541_v43  ;;  %v774_v19 = vperm.slane %v1448_v56, 0 }
  0xef   :  { %v714_v17 = vmul.f32 %v711_v52, %v703_v47  ;;  %v755_v28 = vperm.slane %v988_v24, 1  ;;  %v974_v30 = vld [vmem:[%s1551_s1 + $0x50] ss:$8 sm:$0x3]  ;;  %v581_v56 = vsel %vm46_vm0, %v1376_v20, %v1372_v18  ;;  %v754_v42 = vperm.slane %v988_v24, 0 }
  0xf0   :  { %v717_v57 = vadd.f32 %v715_v50, %v699_v49  ;;  %v554_v33 = vadd.f32 %v552_v26, %v536_v25  ;;  %v592_v63 = vperm.slane %v974_v30, 1  ;;  %v591_v21 = vperm.slane %v974_v30, 0  ;;  %v1507_v20 = vld [vmem:[%s1551_s1 + $0x71] ss:$8 sm:$0x3] }
  0xf1   :  { %v716_v10 = vadd.f32 %v714_v17, %v698_v62  ;;  %v766_v45 = vmul.f32 %v1422_v54, %v755_v28  ;;  %v993_v52 = vld [vmem:[%s1551_s1 + $0x70] ss:$8 sm:$0x3]  ;;  %v778_v53 = vmul.f32 %v1090_v4, %v774_v19  ;;  %v616_v18 = vmul.f32 %v1117_v7, %v612_v1 }
  0xf2   :  { %v730_v41 = vadd.f32 %v728_v9, %v717_v57  ;;  %v567_v49 = vadd.f32 %v565_v35, %v554_v33  ;;  %v603_v35 = vmul.f32 %v598_v29, %v592_v63  ;;  %v602_v3 = vmul.f32 %v599_v15, %v591_v21 }
  0xf3   :  { %v729_v50 = vadd.f32 %v727_v60, %v716_v10  ;;  %v615_v60 = vmul.f32 %v1112_v6, %v611_v36  ;;  %v806_v26 = vperm.slane %v993_v52, 1  ;;  %v826_v4 = vperm.slane %v1507_v20, 1 }
  0xf4   :  { %v1414_v46 = vpop.permute.xlu0 %742  ;;  %v623_v9 = vperm.slane %v978_v55, 1  ;;  %v805_v25 = vperm.slane %v993_v52, 0  ;;  %v825_v33 = vperm.slane %v1507_v20, 0 }
  0xf5   :  { %v1420_v51 = vpop.permute.xlu1 %758  ;;  %v744_v34 = vsel %vm46_vm0, %v1383_v58, %v1414_v46  ;;  %v748_v31 = vmul.f32 %v1414_v46, %v735_v11  ;;  %v992_v58 = vld [vmem:[%s1551_s1 + $0x67] ss:$8 sm:$0x3]  ;;  %v629_v46 = vpop.permute.xlu2 %628 }
  0xf6   :  { %v747_v43 = vmul.f32 %v744_v34, %v734_v27  ;;  %v762_v23 = vsel %vm65_vm1, %v1420_v51, %v1422_v54  ;;  %v584_v51 = vmul.f32 %v581_v56, %v571_v38  ;;  %v566_v54 = vadd.f32 %v564_v59, %v553_v39 }
  0xf7   :  { %v750_v47 = vadd.f32 %v748_v31, %v730_v41  ;;  %v786_v16 = vperm.slane %v992_v58, 1  ;;  %v765_v61 = vmul.f32 %v762_v23, %v754_v42  ;;  %v587_v59 = vadd.f32 %v585_v48, %v567_v49 }
  0xf8   :  { %v749_v11 = vadd.f32 %v747_v43, %v729_v50  ;;  %v785_v17 = vperm.slane %v992_v58, 0  ;;  %v586_v14 = vadd.f32 %v584_v51, %v566_v54  ;;  %v642_v38 = vperm.slane %v979_v8, 0 }
  0xf9   :  { %v768_v24 = vadd.f32 %v766_v45, %v750_v47  ;;  %v605_v57 = vadd.f32 %v603_v35, %v587_v59  ;;  %v830_v39 = vmul.f32 %v1117_v7, %v826_v4  ;;  %v998_v47 = vld [vmem:[%s1551_s1 + $0x73] ss:$8 sm:$0x3]  ;;  %v829_v49 = vmul.f32 %v1112_v6, %v825_v33 }
  0xfa   :  { %v767_v19 = vadd.f32 %v765_v61, %v749_v11  ;;  %v604_v2 = vadd.f32 %v602_v3, %v586_v14  ;;  %v857_v54 = vperm.slane %v998_v47, 1 }
  0xfb   :  { %v781_v28 = vadd.f32 %v1482_v37, %v768_v24  ;;  %v618_v56 = vadd.f32 %v616_v18, %v605_v57  ;;  %v856_v18 = vperm.slane %v998_v47, 0 }
  0xfc   :  { %v1443_v40 = vpop.permute.xlu0 %791  ;;  %v780_v37 = vadd.f32 %v778_v53, %v767_v19  ;;  %v617_v43 = vadd.f32 %v615_v60, %v604_v2 }
  0xfd   :  { %v1450_v44 = vpop.permute.xlu1 %793 }
  0xfe   :  { %v799_v0 = vmul.f32 %v1450_v44, %v786_v16  ;;  %v795_v29 = vsel %vm46_vm0, %v1443_v40, %v1450_v44  ;;  %v997_v40 = vld [vmem:[%s1551_s1 + $0x72] ss:$8 sm:$0x3]  ;;  %v845_v44 = vpop.permute.xlu2 %844  ;;  %s1032_s1 = smov [#allocation2]  }
  0xff   :  { %v798_v31 = vmul.f32 %v795_v29, %v785_v17  ;;  %v836_v42 = vperm.slane %v997_v40, 0  ;;  %s878_s22 = sshll.u32 %s1032_s1, 4  ;;  %s879_s22 = int_to_ptr.vmem [resolvable:$true] %s878_s22 }
 0x100   :  { %v801_v10 = vadd.f32 %v799_v0, %v781_v28 }
 0x104   :  { %v1485_v13 = vpop.permute.xlu0 %809 }
 0x105   :  { %v812_v5 = vpop.permute.xlu1 %811 }
 0x106   :  { %v817_v30 = vmul.f32 %v812_v5, %v806_v26  ;;  %v813_v34 = vsel %vm65_vm1, %v1485_v13, %v812_v5  ;;  %v837_v5 = vperm.slane %v997_v40, 1  ;;  %v861_v55 = vpop.permute.xlu2 %860 }
 0x107   :  { %v816_v41 = vmul.f32 %v813_v34, %v805_v25 }
 0x108   :  { %v819_v13 = vadd.f32 %v817_v30, %v801_v10  ;;  %v850_v53 = vmul.f32 %v845_v44, %v837_v5 }
 0x10a   :  { %v832_v52 = vadd.f32 %v830_v39, %v819_v13 }
 0x10c   :  { %v631_v22 = vpop.permute.xlu0 %630  ;;  %v852_v6 = vadd.f32 %v850_v53, %v832_v52 }
 0x10d   :  { %v843_v62 = vpop.permute.xlu1 %842  ;;  %v632_v27 = vsel %vm46_vm0, %v629_v46, %v631_v22  ;;  %v636_v1 = vmul.f32 %v631_v22, %v623_v9  ;;  %v800_v46 = vadd.f32 %v798_v31, %v780_v37 }
 0x10e   :  { %v635_v36 = vmul.f32 %v632_v27, %v622_v12  ;;  %v846_v7 = vsel %vm46_vm0, %v843_v62, %v845_v44 }
 0x10f   :  { %v638_v45 = vadd.f32 %v636_v1, %v618_v56  ;;  %v818_v15 = vadd.f32 %v816_v41, %v800_v46  ;;  %v849_v16 = vmul.f32 %v846_v7, %v836_v42 }
 0x110   :  { %v637_v20 = vadd.f32 %v635_v36, %v617_v43 }
 0x111   :  { %v831_v35 = vadd.f32 %v829_v49, %v818_v15 }
 0x113   :  { %v851_v60 = vadd.f32 %v849_v16, %v831_v35 }
 0x114   :  { %v647_v63 = vpop.permute.xlu0 %646 }
 0x115   :  { %v649_v58 = vpop.permute.xlu1 %648 }
 0x116   :  { %v654_v21 = vmul.f32 %v649_v58, %v643_v32  ;;  %v650_v23 = vsel %vm65_vm1, %v647_v63, %v649_v58 }
 0x117   :  { %v653_v48 = vmul.f32 %v650_v23, %v642_v38 }
 0x118   :  { %v656_v50 = vadd.f32 %v654_v21, %v638_v45 }
 0x119   :  { %v655_v51 = vadd.f32 %v653_v48, %v637_v20 }
 0x11a   :  { %659 = vst.msk [vmem:[#allocation2 + $0x28] sm:$0xff] %vm230_vm2, %v656_v50 }
 0x11b   :  { %658 = vst [vmem:[#allocation2 + $0x20] sm:$0xff] %v655_v51 }
 0x11c   :  { %v863_v61 = vpop.permute.xlu0 %862 }
 0x11d   :  { %v864_v11 = vsel %vm65_vm1, %v861_v55, %v863_v61  ;;  %v868_v22 = vmul.f32 %v863_v61, %v857_v54 }
 0x11e   :  { %v867_v3 = vmul.f32 %v864_v11, %v856_v18 }
 0x11f   :  { %v870_v24 = vadd.f32 %v868_v22, %v852_v6 }
 0x120   :  { %v869_v26 = vadd.f32 %v867_v3, %v851_v60 }
 0x121   :  { %873 = vst.msk [vmem:[#allocation2 + $0x38] sm:$0xff] %vm230_vm2, %v870_v24 }
 0x122   :  { %872 = vst [vmem:[#allocation2 + $0x30] sm:$0xff] %v869_v26 }
 0x123   :  { %886 = dma.vmem_to_hbm [thread:$0]  %s879_s22, 1024, %s881_s25, [#allocation3], %s1033_s26, %s1033_s26, %s1034_s27  }
 0x124   :  { %1028 = dma.done.wait [#allocation3], 1024  }
 0x125   :  { %1029 = vsyncadd [#allocation3], 4294966272 }
 0x126   :  { %891 = vsyncpa [#allocation3], 1 }

</bundles_post_ra>
